<compile_context>
chip_gen: v7x
topology: tpu7x:2x2x1
jax: 0.10.0
libtpu: 0.0.40
codegen_flags: <defaults>
</compile_context>

<pallas_src>
import functools

import numpy as np
import jax
import jax.numpy as jnp
from jax.experimental import pallas as pl
from jax.experimental.pallas import tpu as pltpu


def _vmem_spec():
    # whole array resident in VMEM (no tiling needed at these sizes)
    return pl.BlockSpec(memory_space=pltpu.MemorySpace.VMEM)


# --------------------------- fused agent kernel -------------------------------
def agent_fused_kernel(x_ref, wrow_ref, brow_ref, w1p_ref, b1_ref,
                       xtail_ref, h_ref, hebb_ref,
                       wfcp_ref, bfc_ref, wrec_ref, alpha_ref,
                       gamma_ref, beta_ref, whead_ref, bhead_ref,
                       wmf_ref, bmf_ref,
                       packed_ref, hout_ref, hebbout_ref,
                       xbuf,
                       *, action_size, feature_size, out_h, batch):
    f32 = jnp.float32
    A = action_size
    F = feature_size

    # ---- conv (3x3 VALID) as ONE lane-dense matmul over im2row rows ----------
    # x: (B*OH, 128)  wrow: (128, OW*16)  ->  convrow: (B*OH, OW*16)
    convrow = jnp.maximum(
        jnp.dot(x_ref[...], wrow_ref[...], preferred_element_type=f32)
        + brow_ref[...], 0.0)

    # ---- encoder Linear: single (B, OH*OW*16) @ (OH*OW*16, F) matmul,
    #      evaluated as OH static K-chunks (free on the MXU, no relayout) ------
    acc = jnp.dot(convrow[0:batch, :], w1p_ref[0], preferred_element_type=f32)
    for ph in range(1, out_h):
        slab = convrow[ph * batch:(ph + 1) * batch, :]          # (B, OW*16)
        acc = acc + jnp.dot(slab, w1p_ref[ph], preferred_element_type=f32)
    feat = jnp.maximum(acc + b1_ref[...], 0.0)                   # (B, F)

    h_pre = h_ref[...]
    hebb = hebb_ref[...]

    # ---- fc(x), x = [feat | prev_action | prev_reward | 0...]: ONE matmul ----
    xbuf[...] = xtail_ref[...]          # lanes [F, F+A+1) filled by the wrapper
    xbuf[:, 0:F] = feat                 # static lane-slice store
    pre = (jnp.dot(xbuf[...], wfcp_ref[...], preferred_element_type=f32)
           + bfc_ref[...])

    # ---- plastic recurrence: shared MXU matmul + fused elementwise reduce
    #      over hebb (weight_eff never materialized) ----------------------------
    rec = (jnp.dot(h_pre, wrec_ref[...], preferred_element_type=f32)
           + jnp.sum(h_pre[:, :, None] * (alpha_ref[...][None, :, :] * hebb),
                     axis=1))

    # ---- LayerNorm (single-pass stats, eps = 1e-5) + tanh ---------------------
    z = pre + rec
    mu = jnp.mean(z, axis=1, keepdims=True)
    var = jnp.maximum(jnp.mean(z * z, axis=1, keepdims=True) - mu * mu, 0.0)
    h_post = jnp.tanh((z - mu) * jax.lax.rsqrt(var + 1e-5)
                      * gamma_ref[...] + beta_ref[...])

    # ---- packed heads: one lane-dense matmul.
    #      lanes [0, A) = actor logits, lane A = critic, lane A+1 = modulator.
    head = (jnp.dot(h_post, whead_ref[...], preferred_element_type=f32)
            + bhead_ref[...])                                    # (B, 128)
    lane = jax.lax.broadcasted_iota(jnp.int32, head.shape, 1)

    # modulator m = tanh(static lane slice), no cross-lane reduce
    m = jnp.tanh(head[:, A + 1:A + 2])                           # (B, 1)

    # actor softmax over lanes [0, A); exact normalization
    logits = jnp.where(lane < A, head, -jnp.inf)
    lmax = jnp.max(logits, axis=1, keepdims=True)
    e = jnp.exp(logits - lmax)                   # exact zeros outside [0, A)
    probs = e / jnp.sum(e, axis=1, keepdims=True)

    # lane-dense packed output: [probs | value | m | zeros...]
    packed_ref[...] = (probs
                       + jnp.where(lane == A, head, 0.0)
                       + jnp.where(lane == A + 1, m, 0.0))

    # ---- neuromodulated, clipped hebbian update; eta folded into h_post ------
    eta_h = (m * wmf_ref[...] + bmf_ref[...]) * h_post           # (B, Hd)
    hebbout_ref[...] = jnp.clip(
        hebb + h_pre[:, :, None] * eta_h[:, None, :], -2.0, 2.0)

    hout_ref[...] = h_post


# --------------------------- one-time parameter packing ------------------------
def pack_params(params, obs_shape):
    """Repack torch-layout parameters into kernel-friendly lane-dense slabs.

    Done ONCE per set of parameters and reused across timesteps."""
    C, H, W = obs_shape
    OH, OW = H - 2, W - 2

    wconv = np.asarray(params["Wconv"], np.float32)              # (NC, C, 3, 3)
    NC = wconv.shape[0]
    F = int(params["W1"].shape[0])
    Hd = int(params["weight"].shape[0])
    A = int(params["Wa"].shape[0])

    # --- conv weight, im2row form: rows (c, dh, w) -> cols (pw, n) ---
    Krow = C * 3 * W
    Kpad = ((Krow + 127) // 128) * 128
    Q = OW * NC
    wrow = np.zeros((Kpad, Q), np.float32)
    for c in range(C):
        for dh in range(3):
            for w in range(W):
                k = (c * 3 + dh) * W + w
                for pw in range(OW):
                    dw = w - pw
                    if 0 <= dw < 3:
                        wrow[k, pw * NC:(pw + 1) * NC] = wconv[:, c, dh, dw]
    brow = np.tile(np.asarray(params["bconv"], np.float32), OW).reshape(1, Q)

    # --- encoder weight, chunked per output row ph: (OH, OW*NC, F) ---
    w1 = np.asarray(params["W1"], np.float32).reshape(F, NC, OH, OW)
    w1p = np.ascontiguousarray(w1.transpose(2, 3, 1, 0)).reshape(OH, Q, F)
    b1 = np.asarray(params["b1"], np.float32).reshape(1, F)

    # --- fc weight, zero-padded to a single (128, Hd) matmul ---
    Ki = 128
    assert F + A + 1 <= Ki
    wfc = np.asarray(params["Wfc"], np.float32)                  # (Hd, F+A+1)
    wfcp = np.zeros((Ki, Hd), np.float32)
    wfcp[:F + A + 1, :] = wfc.T
    bfc = np.asarray(params["bfc"], np.float32).reshape(1, Hd)

    # --- packed heads: actor in lanes [0,A), critic at A, modulator at A+1 ---
    Lp = 128
    assert A + 2 <= Lp
    whead = np.zeros((Hd, Lp), np.float32)
    whead[:, :A] = np.asarray(params["Wa"], np.float32).T
    whead[:, A] = np.asarray(params["Wcr"], np.float32)[0]
    whead[:, A + 1] = np.asarray(params["Wm"], np.float32)[0]
    bhead = np.zeros((1, Lp), np.float32)
    bhead[0, :A] = np.asarray(params["ba"], np.float32)
    bhead[0, A] = np.asarray(params["bcr"], np.float32)[0]
    bhead[0, A + 1] = np.asarray(params["bm"], np.float32)[0]

    return dict(
        wrow=jnp.asarray(wrow), brow=jnp.asarray(brow),
        w1p=jnp.asarray(w1p), b1=jnp.asarray(b1),
        wfcp=jnp.asarray(wfcp), bfc=jnp.asarray(bfc),
        weight=jnp.asarray(params["weight"], jnp.float32),
        alpha=jnp.asarray(params["alpha"], jnp.float32),
        gamma=jnp.asarray(params["gamma"], jnp.float32).reshape(1, Hd),
        beta=jnp.asarray(params["beta"], jnp.float32).reshape(1, Hd),
        whead=jnp.asarray(whead), bhead=jnp.asarray(bhead),
        wmf=jnp.asarray(params["Wmf"], jnp.float32).reshape(1, Hd),
        bmf=jnp.asarray(params["bmf"], jnp.float32).reshape(1, Hd),
        action_size=A, feature_size=F, hidden_size=Hd,
        out_h=OH, out_w=OW, krow=Krow, kpad=Kpad, ki=Ki, lanes_packed=Lp,
    )


# --------------------------- per-step wrapper ----------------------------------
def backpropamine_forward(pp, obs, prev_action, prev_reward, h=None, hebb=None):
    B, C, H, W = obs.shape
    OH, OW = H - 2, W - 2
    F = pp["feature_size"]
    A = pp["action_size"]
    Hd = pp["hidden_size"]
    Ki = pp["ki"]
    Lp = pp["lanes_packed"]
    Kpad = pp["kpad"]
    Krow = pp["krow"]

    if h is None:
        h = jnp.zeros((B, Hd), jnp.float32)
    if hebb is None:
        hebb = jnp.zeros((B, Hd, Hd), jnp.float32)

    # per-step input layout only (no compute): im2row rows g = ph*B + b,
    # columns (c, dh, w), zero-padded to Kpad lanes.
    rows = jnp.stack([obs[:, :, dh:dh + OH, :] for dh in range(3)], axis=2)
    X = rows.transpose(3, 0, 1, 2, 4).reshape(B * OH, Krow)
    X = jnp.pad(X, ((0, 0), (0, Kpad - Krow))).astype(jnp.float32)

    # tail of the fc input: prev_action at lanes [F, F+A), prev_reward at F+A.
    xtail = jnp.zeros((B, Ki), jnp.float32)
    xtail = xtail.at[:, F:F + A].set(prev_action.astype(jnp.float32))
    xtail = xtail.at[:, F + A:F + A + 1].set(prev_reward.astype(jnp.float32))

    args = (X, pp["wrow"], pp["brow"], pp["w1p"], pp["b1"],
            xtail, h, hebb,                                   # hebb: input idx 7
            pp["wfcp"], pp["bfc"], pp["weight"], pp["alpha"],
            pp["gamma"], pp["beta"], pp["whead"], pp["bhead"],
            pp["wmf"], pp["bmf"])

    out_shapes = (
        jax.ShapeDtypeStruct((B, Lp), jnp.float32),       # packed: probs|val|m
        jax.ShapeDtypeStruct((B, Hd), jnp.float32),       # h
        jax.ShapeDtypeStruct((B, Hd, Hd), jnp.float32),   # hebb (aliased)
    )
    packed, h_out, hebb_out = pl.pallas_call(
        functools.partial(agent_fused_kernel, action_size=A, feature_size=F,
                          out_h=OH, batch=B),
        out_shape=out_shapes,
        in_specs=[_vmem_spec() for _ in args],
        out_specs=tuple(_vmem_spec() for _ in out_shapes),
        scratch_shapes=[pltpu.VMEM((B, Ki), jnp.float32)],
        input_output_aliases={7: 2},                      # hebb in -> hebb out
    )(*args)

    probs = packed[:, :A]
    value = packed[:, A:A + 1]
    m = packed[:, A + 1:A + 2]
    return probs, value, m, h_out, hebb_out


# --------------------------- pure-JAX reference --------------------------------
def reference_forward(params, obs, prev_action, prev_reward, h, hebb):
    HI = jax.lax.Precision.HIGHEST
    conv = jax.lax.conv_general_dilated(
        obs, params["Wconv"], (1, 1), "VALID",
        dimension_numbers=("NCHW", "OIHW", "NCHW"), precision=HI)
    conv = jnp.maximum(conv + params["bconv"][None, :, None, None], 0.0)
    flat = conv.reshape(obs.shape[0], -1)
    feat = jnp.maximum(jnp.dot(flat, params["W1"].T, precision=HI) + params["b1"], 0.0)
    x = jnp.concatenate([feat, prev_action, prev_reward], axis=1)
    weight_eff = params["weight"][None] + params["alpha"][None] * hebb
    pre = (jnp.dot(x, params["Wfc"].T, precision=HI) + params["bfc"]
           + jnp.einsum("bh,bhk->bk", h, weight_eff, precision=HI))
    mu = pre.mean(axis=1, keepdims=True)
    var = ((pre - mu) ** 2).mean(axis=1, keepdims=True)
    h_post = jnp.tanh((pre - mu) / jnp.sqrt(var + 1e-5) * params["gamma"] + params["beta"])
    m = jnp.tanh(jnp.dot(h_post, params["Wm"].T, precision=HI) + params["bm"])
    eta = jnp.dot(m, params["Wmf"].T, precision=HI) + params["bmf"]
    delta = eta[:, None, :] * (h[:, :, None] * h_post[:, None, :])
    hebb_new = jnp.clip(hebb + delta, -2.0, 2.0)
    probs = jax.nn.softmax(jnp.dot(h_post, params["Wa"].T, precision=HI) + params["ba"], axis=1)
    val = jnp.dot(h_post, params["Wcr"].T, precision=HI) + params["bcr"]
    return probs, val, m, h_post, hebb_new


if __name__ == "__main__":
    B = 2
    C, H, W = 4, 10, 10                      # obs_shape
    feature_size, hidden_size, action_size = 64, 128, 4
    OH, OW = H - 2, W - 2

    key = jax.random.PRNGKey(0)
    ks = jax.random.split(key, 20)

    def nrm(k, shape, std):
        return (std * jax.random.normal(k, shape)).astype(jnp.float32)

    params = {
        "Wconv": nrm(ks[0], (16, C, 3, 3), 0.1),
        "bconv": nrm(ks[1], (16,), 0.1),
        "W1":    nrm(ks[2], (feature_size, 16 * OH * OW), 0.02),
        "b1":    nrm(ks[3], (feature_size,), 0.02),
        "Wfc":   nrm(ks[4], (hidden_size, feature_size + action_size + 1), 0.05),
        "bfc":   nrm(ks[5], (hidden_size,), 0.05),
        "weight": nrm(ks[6], (hidden_size, hidden_size), 0.001),   # init std=0.001
        "alpha":  nrm(ks[7], (hidden_size, hidden_size), 0.001),   # init std=0.001
        "gamma": jnp.ones((hidden_size,), jnp.float32),            # LayerNorm affine
        "beta":  jnp.zeros((hidden_size,), jnp.float32),
        "Wm":    nrm(ks[8], (1, hidden_size), 0.05),
        "bm":    nrm(ks[9], (1,), 0.05),
        "Wmf":   nrm(ks[10], (hidden_size, 1), 0.05),
        "bmf":   nrm(ks[11], (hidden_size,), 0.05),
        "Wa":    nrm(ks[12], (action_size, hidden_size), 0.05),
        "ba":    nrm(ks[13], (action_size,), 0.05),
        "Wcr":   nrm(ks[14], (1, hidden_size), 0.05),
        "bcr":   nrm(ks[15], (1,), 0.05),
    }

    obs = jax.random.normal(ks[16], (B, C, H, W), jnp.float32)
    prev_action = jax.nn.one_hot(jnp.array([1, 3]), action_size, dtype=jnp.float32)
    prev_reward = jax.random.normal(ks[17], (B, 1), jnp.float32)
    h0 = 0.1 * jax.random.normal(ks[18], (B, hidden_size), jnp.float32)
    hebb0 = 0.01 * jax.random.normal(ks[19], (B, hidden_size, hidden_size), jnp.float32)

    refs = reference_forward(params, obs, prev_action, prev_reward, h0, hebb0)
    refs = jax.block_until_ready(refs)

    packed = pack_params(params, (C, H, W))                 # one-time packing
    outs = backpropamine_forward(packed, obs, prev_action, prev_reward, h0, hebb0)
    outs = jax.block_until_ready(outs)

    for o, r in zip(outs, refs):
        np.testing.assert_allclose(np.asarray(o), np.asarray(r), rtol=2e-3, atol=2e-3)

    print("KERNEL_OK")
</pallas_src>

<mosaic_0001>
module attributes {stable_mosaic.version = 11 : i64} {
  func.func @agent_fused_kernel(%arg0: memref<16x128xf32, #tpu.memory_space<vmem>>, %arg1: memref<128x128xf32, #tpu.memory_space<vmem>>, %arg2: memref<1x128xf32, #tpu.memory_space<vmem>>, %arg3: memref<8x128x64xf32, #tpu.memory_space<vmem>>, %arg4: memref<1x64xf32, #tpu.memory_space<vmem>>, %arg5: memref<2x128xf32, #tpu.memory_space<vmem>>, %arg6: memref<2x128xf32, #tpu.memory_space<vmem>>, %arg7: memref<2x128x128xf32, #tpu.memory_space<vmem>>, %arg8: memref<128x128xf32, #tpu.memory_space<vmem>>, %arg9: memref<1x128xf32, #tpu.memory_space<vmem>>, %arg10: memref<128x128xf32, #tpu.memory_space<vmem>>, %arg11: memref<128x128xf32, #tpu.memory_space<vmem>>, %arg12: memref<1x128xf32, #tpu.memory_space<vmem>>, %arg13: memref<1x128xf32, #tpu.memory_space<vmem>>, %arg14: memref<128x128xf32, #tpu.memory_space<vmem>>, %arg15: memref<1x128xf32, #tpu.memory_space<vmem>>, %arg16: memref<1x128xf32, #tpu.memory_space<vmem>>, %arg17: memref<1x128xf32, #tpu.memory_space<vmem>>, %arg18: memref<2x128xf32, #tpu.memory_space<vmem>>, %arg19: memref<2x128xf32, #tpu.memory_space<vmem>>, %arg20: memref<2x128x128xf32, #tpu.memory_space<vmem>>, %arg21: memref<2x128xf32, #tpu.memory_space<vmem>>) attributes {dimension_semantics = [], scalar_prefetch = 0 : i64, scratch_operands = 1 : i64, tpu.core_type = #tpu.core_type<tc>} {
    %c0 = arith.constant 0 : index
    %c0_0 = arith.constant 0 : index
    %0 = vector.load %arg0[%c0, %c0_0] : memref<16x128xf32, #tpu.memory_space<vmem>>, vector<16x128xf32>
    %c0_1 = arith.constant 0 : index
    %c0_2 = arith.constant 0 : index
    %1 = vector.load %arg1[%c0_1, %c0_2] : memref<128x128xf32, #tpu.memory_space<vmem>>, vector<128x128xf32>
    %cst = arith.constant dense<0.000000e+00> : vector<16x128xf32>
    %2 = tpu.matmul %0, %1, %cst {dimension_numbers = #tpu.dot_dimension_numbers<[1], [0], [0], [1], [0, 0, 1, 1], [], []>} : vector<16x128xf32>, vector<128x128xf32>, vector<16x128xf32> -> vector<16x128xf32>
    %c0_3 = arith.constant 0 : index
    %c0_4 = arith.constant 0 : index
    %3 = vector.load %arg2[%c0_3, %c0_4] : memref<1x128xf32, #tpu.memory_space<vmem>>, vector<1x128xf32>
    %4 = vector.broadcast %3 : vector<1x128xf32> to vector<16x128xf32>
    %5 = arith.addf %2, %4 : vector<16x128xf32>
    %cst_5 = arith.constant 0.000000e+00 : f32
    %6 = vector.broadcast %cst_5 : f32 to vector<16x128xf32>
    %7 = arith.maximumf %5, %6 : vector<16x128xf32>
    %8 = vector.extract_strided_slice %7 {offsets = [0, 0], sizes = [2, 128], strides = [1, 1]} : vector<16x128xf32> to vector<2x128xf32>
    %c0_6 = arith.constant 0 : index
    %c0_7 = arith.constant 0 : index
    %c0_8 = arith.constant 0 : index
    %9 = vector.load %arg3[%c0_6, %c0_7, %c0_8] : memref<8x128x64xf32, #tpu.memory_space<vmem>>, vector<1x128x64xf32>
    %10 = vector.shape_cast %9 : vector<1x128x64xf32> to vector<128x64xf32>
    %cst_9 = arith.constant dense<0.000000e+00> : vector<2x64xf32>
    %11 = tpu.matmul %8, %10, %cst_9 {dimension_numbers = #tpu.dot_dimension_numbers<[1], [0], [0], [1], [0, 0, 1, 1], [], []>} : vector<2x128xf32>, vector<128x64xf32>, vector<2x64xf32> -> vector<2x64xf32>
    %12 = vector.extract_strided_slice %7 {offsets = [2, 0], sizes = [2, 128], strides = [1, 1]} : vector<16x128xf32> to vector<2x128xf32>
    %c1 = arith.constant 1 : index
    %c0_10 = arith.constant 0 : index
    %c0_11 = arith.constant 0 : index
    %13 = vector.load %arg3[%c1, %c0_10, %c0_11] : memref<8x128x64xf32, #tpu.memory_space<vmem>>, vector<1x128x64xf32>
    %14 = vector.shape_cast %13 : vector<1x128x64xf32> to vector<128x64xf32>
    %cst_12 = arith.constant dense<0.000000e+00> : vector<2x64xf32>
    %15 = tpu.matmul %12, %14, %cst_12 {dimension_numbers = #tpu.dot_dimension_numbers<[1], [0], [0], [1], [0, 0, 1, 1], [], []>} : vector<2x128xf32>, vector<128x64xf32>, vector<2x64xf32> -> vector<2x64xf32>
    %16 = arith.addf %11, %15 : vector<2x64xf32>
    %17 = vector.extract_strided_slice %7 {offsets = [4, 0], sizes = [2, 128], strides = [1, 1]} : vector<16x128xf32> to vector<2x128xf32>
    %c2 = arith.constant 2 : index
    %c0_13 = arith.constant 0 : index
    %c0_14 = arith.constant 0 : index
    %18 = vector.load %arg3[%c2, %c0_13, %c0_14] : memref<8x128x64xf32, #tpu.memory_space<vmem>>, vector<1x128x64xf32>
    %19 = vector.shape_cast %18 : vector<1x128x64xf32> to vector<128x64xf32>
    %cst_15 = arith.constant dense<0.000000e+00> : vector<2x64xf32>
    %20 = tpu.matmul %17, %19, %cst_15 {dimension_numbers = #tpu.dot_dimension_numbers<[1], [0], [0], [1], [0, 0, 1, 1], [], []>} : vector<2x128xf32>, vector<128x64xf32>, vector<2x64xf32> -> vector<2x64xf32>
    %21 = arith.addf %16, %20 : vector<2x64xf32>
    %22 = vector.extract_strided_slice %7 {offsets = [6, 0], sizes = [2, 128], strides = [1, 1]} : vector<16x128xf32> to vector<2x128xf32>
    %c3 = arith.constant 3 : index
    %c0_16 = arith.constant 0 : index
    %c0_17 = arith.constant 0 : index
    %23 = vector.load %arg3[%c3, %c0_16, %c0_17] : memref<8x128x64xf32, #tpu.memory_space<vmem>>, vector<1x128x64xf32>
    %24 = vector.shape_cast %23 : vector<1x128x64xf32> to vector<128x64xf32>
    %cst_18 = arith.constant dense<0.000000e+00> : vector<2x64xf32>
    %25 = tpu.matmul %22, %24, %cst_18 {dimension_numbers = #tpu.dot_dimension_numbers<[1], [0], [0], [1], [0, 0, 1, 1], [], []>} : vector<2x128xf32>, vector<128x64xf32>, vector<2x64xf32> -> vector<2x64xf32>
    %26 = arith.addf %21, %25 : vector<2x64xf32>
    %27 = vector.extract_strided_slice %7 {offsets = [8, 0], sizes = [2, 128], strides = [1, 1]} : vector<16x128xf32> to vector<2x128xf32>
    %c4 = arith.constant 4 : index
    %c0_19 = arith.constant 0 : index
    %c0_20 = arith.constant 0 : index
    %28 = vector.load %arg3[%c4, %c0_19, %c0_20] : memref<8x128x64xf32, #tpu.memory_space<vmem>>, vector<1x128x64xf32>
    %29 = vector.shape_cast %28 : vector<1x128x64xf32> to vector<128x64xf32>
    %cst_21 = arith.constant dense<0.000000e+00> : vector<2x64xf32>
    %30 = tpu.matmul %27, %29, %cst_21 {dimension_numbers = #tpu.dot_dimension_numbers<[1], [0], [0], [1], [0, 0, 1, 1], [], []>} : vector<2x128xf32>, vector<128x64xf32>, vector<2x64xf32> -> vector<2x64xf32>
    %31 = arith.addf %26, %30 : vector<2x64xf32>
    %32 = vector.extract_strided_slice %7 {offsets = [10, 0], sizes = [2, 128], strides = [1, 1]} : vector<16x128xf32> to vector<2x128xf32>
    %c5 = arith.constant 5 : index
    %c0_22 = arith.constant 0 : index
    %c0_23 = arith.constant 0 : index
    %33 = vector.load %arg3[%c5, %c0_22, %c0_23] : memref<8x128x64xf32, #tpu.memory_space<vmem>>, vector<1x128x64xf32>
    %34 = vector.shape_cast %33 : vector<1x128x64xf32> to vector<128x64xf32>
    %cst_24 = arith.constant dense<0.000000e+00> : vector<2x64xf32>
    %35 = tpu.matmul %32, %34, %cst_24 {dimension_numbers = #tpu.dot_dimension_numbers<[1], [0], [0], [1], [0, 0, 1, 1], [], []>} : vector<2x128xf32>, vector<128x64xf32>, vector<2x64xf32> -> vector<2x64xf32>
    %36 = arith.addf %31, %35 : vector<2x64xf32>
    %37 = vector.extract_strided_slice %7 {offsets = [12, 0], sizes = [2, 128], strides = [1, 1]} : vector<16x128xf32> to vector<2x128xf32>
    %c6 = arith.constant 6 : index
    %c0_25 = arith.constant 0 : index
    %c0_26 = arith.constant 0 : index
    %38 = vector.load %arg3[%c6, %c0_25, %c0_26] : memref<8x128x64xf32, #tpu.memory_space<vmem>>, vector<1x128x64xf32>
    %39 = vector.shape_cast %38 : vector<1x128x64xf32> to vector<128x64xf32>
    %cst_27 = arith.constant dense<0.000000e+00> : vector<2x64xf32>
    %40 = tpu.matmul %37, %39, %cst_27 {dimension_numbers = #tpu.dot_dimension_numbers<[1], [0], [0], [1], [0, 0, 1, 1], [], []>} : vector<2x128xf32>, vector<128x64xf32>, vector<2x64xf32> -> vector<2x64xf32>
    %41 = arith.addf %36, %40 : vector<2x64xf32>
    %42 = vector.extract_strided_slice %7 {offsets = [14, 0], sizes = [2, 128], strides = [1, 1]} : vector<16x128xf32> to vector<2x128xf32>
    %c7 = arith.constant 7 : index
    %c0_28 = arith.constant 0 : index
    %c0_29 = arith.constant 0 : index
    %43 = vector.load %arg3[%c7, %c0_28, %c0_29] : memref<8x128x64xf32, #tpu.memory_space<vmem>>, vector<1x128x64xf32>
    %44 = vector.shape_cast %43 : vector<1x128x64xf32> to vector<128x64xf32>
    %cst_30 = arith.constant dense<0.000000e+00> : vector<2x64xf32>
    %45 = tpu.matmul %42, %44, %cst_30 {dimension_numbers = #tpu.dot_dimension_numbers<[1], [0], [0], [1], [0, 0, 1, 1], [], []>} : vector<2x128xf32>, vector<128x64xf32>, vector<2x64xf32> -> vector<2x64xf32>
    %46 = arith.addf %41, %45 : vector<2x64xf32>
    %c0_31 = arith.constant 0 : index
    %c0_32 = arith.constant 0 : index
    %47 = vector.load %arg4[%c0_31, %c0_32] : memref<1x64xf32, #tpu.memory_space<vmem>>, vector<1x64xf32>
    %48 = vector.broadcast %47 : vector<1x64xf32> to vector<2x64xf32>
    %49 = arith.addf %46, %48 : vector<2x64xf32>
    %cst_33 = arith.constant 0.000000e+00 : f32
    %50 = vector.broadcast %cst_33 : f32 to vector<2x64xf32>
    %51 = arith.maximumf %49, %50 : vector<2x64xf32>
    %c0_34 = arith.constant 0 : index
    %c0_35 = arith.constant 0 : index
    %52 = vector.load %arg6[%c0_34, %c0_35] : memref<2x128xf32, #tpu.memory_space<vmem>>, vector<2x128xf32>
    %c0_36 = arith.constant 0 : index
    %c0_37 = arith.constant 0 : index
    %c0_38 = arith.constant 0 : index
    %53 = vector.load %arg7[%c0_36, %c0_37, %c0_38] : memref<2x128x128xf32, #tpu.memory_space<vmem>>, vector<2x128x128xf32>
    %c0_39 = arith.constant 0 : index
    %c0_40 = arith.constant 0 : index
    %54 = vector.load %arg5[%c0_39, %c0_40] : memref<2x128xf32, #tpu.memory_space<vmem>>, vector<2x128xf32>
    %c0_41 = arith.constant 0 : index
    %c0_42 = arith.constant 0 : index
    %55 = vector.load %arg21[%c0_41, %c0_42] : memref<2x128xf32, #tpu.memory_space<vmem>>, vector<2x128xf32>
    tpu.vector_store %arg21[%c0_41, %c0_42], %54 {strides = array<i32>} : memref<2x128xf32, #tpu.memory_space<vmem>>, vector<2x128xf32>,
    %c0_43 = arith.constant 0 : index
    %c0_44 = arith.constant 0 : index
    %56 = vector.load %arg21[%c0_43, %c0_44] : memref<2x128xf32, #tpu.memory_space<vmem>>, vector<2x64xf32>
    tpu.vector_store %arg21[%c0_43, %c0_44], %51 {strides = array<i32>} : memref<2x128xf32, #tpu.memory_space<vmem>>, vector<2x64xf32>,
    %c0_45 = arith.constant 0 : index
    %c0_46 = arith.constant 0 : index
    %57 = vector.load %arg21[%c0_45, %c0_46] : memref<2x128xf32, #tpu.memory_space<vmem>>, vector<2x128xf32>
    %c0_47 = arith.constant 0 : index
    %c0_48 = arith.constant 0 : index
    %58 = vector.load %arg8[%c0_47, %c0_48] : memref<128x128xf32, #tpu.memory_space<vmem>>, vector<128x128xf32>
    %cst_49 = arith.constant dense<0.000000e+00> : vector<2x128xf32>
    %59 = tpu.matmul %57, %58, %cst_49 {dimension_numbers = #tpu.dot_dimension_numbers<[1], [0], [0], [1], [0, 0, 1, 1], [], []>} : vector<2x128xf32>, vector<128x128xf32>, vector<2x128xf32> -> vector<2x128xf32>
    %c0_50 = arith.constant 0 : index
    %c0_51 = arith.constant 0 : index
    %60 = vector.load %arg9[%c0_50, %c0_51] : memref<1x128xf32, #tpu.memory_space<vmem>>, vector<1x128xf32>
    %61 = vector.broadcast %60 : vector<1x128xf32> to vector<2x128xf32>
    %62 = arith.addf %59, %61 : vector<2x128xf32>
    %c0_52 = arith.constant 0 : index
    %c0_53 = arith.constant 0 : index
    %63 = vector.load %arg10[%c0_52, %c0_53] : memref<128x128xf32, #tpu.memory_space<vmem>>, vector<128x128xf32>
    %cst_54 = arith.constant dense<0.000000e+00> : vector<2x128xf32>
    %64 = tpu.matmul %52, %63, %cst_54 {dimension_numbers = #tpu.dot_dimension_numbers<[1], [0], [0], [1], [0, 0, 1, 1], [], []>} : vector<2x128xf32>, vector<128x128xf32>, vector<2x128xf32> -> vector<2x128xf32>
    %65 = vector.shape_cast %52 : vector<2x128xf32> to vector<2x128x1xf32>
    %c0_55 = arith.constant 0 : index
    %c0_56 = arith.constant 0 : index
    %66 = vector.load %arg11[%c0_55, %c0_56] : memref<128x128xf32, #tpu.memory_space<vmem>>, vector<128x128xf32>
    %67 = vector.shape_cast %66 : vector<128x128xf32> to vector<1x128x128xf32>
    %68 = vector.broadcast %67 : vector<1x128x128xf32> to vector<2x128x128xf32>
    %69 = arith.mulf %68, %53 : vector<2x128x128xf32>
    %70 = vector.broadcast %65 : vector<2x128x1xf32> to vector<2x128x128xf32>
    %71 = arith.mulf %70, %69 : vector<2x128x128xf32>
    %cst_57 = arith.constant dense<0.000000e+00> : vector<2x128xf32>
    %72 = vector.multi_reduction <add>, %71, %cst_57 [1] : vector<2x128x128xf32> to vector<2x128xf32>
    %73 = arith.addf %64, %72 : vector<2x128xf32>
    %74 = arith.addf %62, %73 : vector<2x128xf32>
    %cst_58 = arith.constant dense<0.000000e+00> : vector<2xf32>
    %75 = vector.multi_reduction <add>, %74, %cst_58 [1] : vector<2x128xf32> to vector<2xf32>
    %76 = vector.shape_cast %75 : vector<2xf32> to vector<2x1xf32>
    %cst_59 = arith.constant 1.280000e+02 : f32
    %77 = vector.broadcast %cst_59 : f32 to vector<2x1xf32>
    %78 = arith.divf %76, %77 : vector<2x1xf32>
    %79 = arith.mulf %74, %74 : vector<2x128xf32>
    %cst_60 = arith.constant dense<0.000000e+00> : vector<2xf32>
    %80 = vector.multi_reduction <add>, %79, %cst_60 [1] : vector<2x128xf32> to vector<2xf32>
    %81 = vector.shape_cast %80 : vector<2xf32> to vector<2x1xf32>
    %cst_61 = arith.constant 1.280000e+02 : f32
    %82 = vector.broadcast %cst_61 : f32 to vector<2x1xf32>
    %83 = arith.divf %81, %82 : vector<2x1xf32>
    %84 = arith.mulf %78, %78 : vector<2x1xf32>
    %85 = arith.subf %83, %84 : vector<2x1xf32>
    %cst_62 = arith.constant 0.000000e+00 : f32
    %86 = vector.broadcast %cst_62 : f32 to vector<2x1xf32>
    %87 = arith.maximumf %85, %86 : vector<2x1xf32>
    %88 = vector.broadcast %78 : vector<2x1xf32> to vector<2x128xf32>
    %89 = arith.subf %74, %88 : vector<2x128xf32>
    %cst_63 = arith.constant 9.99999974E-6 : f32
    %90 = vector.broadcast %cst_63 : f32 to vector<2x1xf32>
    %91 = arith.addf %87, %90 : vector<2x1xf32>
    %92 = math.rsqrt %91 : vector<2x1xf32>
    %93 = vector.broadcast %92 : vector<2x1xf32> to vector<2x128xf32>
    %94 = arith.mulf %89, %93 : vector<2x128xf32>
    %c0_64 = arith.constant 0 : index
    %c0_65 = arith.constant 0 : index
    %95 = vector.load %arg12[%c0_64, %c0_65] : memref<1x128xf32, #tpu.memory_space<vmem>>, vector<1x128xf32>
    %96 = vector.broadcast %95 : vector<1x128xf32> to vector<2x128xf32>
    %97 = arith.mulf %94, %96 : vector<2x128xf32>
    %c0_66 = arith.constant 0 : index
    %c0_67 = arith.constant 0 : index
    %98 = vector.load %arg13[%c0_66, %c0_67] : memref<1x128xf32, #tpu.memory_space<vmem>>, vector<1x128xf32>
    %99 = vector.broadcast %98 : vector<1x128xf32> to vector<2x128xf32>
    %100 = arith.addf %97, %99 : vector<2x128xf32>
    %101 = math.tanh %100 : vector<2x128xf32>
    %c0_68 = arith.constant 0 : index
    %c0_69 = arith.constant 0 : index
    %102 = vector.load %arg14[%c0_68, %c0_69] : memref<128x128xf32, #tpu.memory_space<vmem>>, vector<128x128xf32>
    %cst_70 = arith.constant dense<0.000000e+00> : vector<2x128xf32>
    %103 = tpu.matmul %101, %102, %cst_70 {dimension_numbers = #tpu.dot_dimension_numbers<[1], [0], [0], [1], [0, 0, 1, 1], [], []>} : vector<2x128xf32>, vector<128x128xf32>, vector<2x128xf32> -> vector<2x128xf32>
    %c0_71 = arith.constant 0 : index
    %c0_72 = arith.constant 0 : index
    %104 = vector.load %arg15[%c0_71, %c0_72] : memref<1x128xf32, #tpu.memory_space<vmem>>, vector<1x128xf32>
    %105 = vector.broadcast %104 : vector<1x128xf32> to vector<2x128xf32>
    %106 = arith.addf %103, %105 : vector<2x128xf32>
    %107 = tpu.iota {dimensions = array<i32: 1>} : vector<2x128xi32>
    %108 = vector.extract_strided_slice %106 {offsets = [0, 5], sizes = [2, 1], strides = [1, 1]} : vector<2x128xf32> to vector<2x1xf32>
    %109 = math.tanh %108 : vector<2x1xf32>
    %c4_i32 = arith.constant 4 : i32
    %110 = vector.broadcast %c4_i32 : i32 to vector<2x128xi32>
    %111 = arith.cmpi slt, %107, %110 : vector<2x128xi32>
    %cst_73 = arith.constant 0xFF800000 : f32
    %112 = vector.broadcast %cst_73 : f32 to vector<2x128xf32>
    %113 = arith.select %111, %106, %112 : vector<2x128xi1>, vector<2x128xf32>
    %cst_74 = arith.constant dense<0xFF800000> : vector<2xf32>
    %114 = vector.multi_reduction <maximumf>, %113, %cst_74 [1] : vector<2x128xf32> to vector<2xf32>
    %115 = vector.shape_cast %114 : vector<2xf32> to vector<2x1xf32>
    %116 = vector.broadcast %115 : vector<2x1xf32> to vector<2x128xf32>
    %117 = arith.subf %113, %116 : vector<2x128xf32>
    %118 = math.exp %117 : vector<2x128xf32>
    %cst_75 = arith.constant dense<0.000000e+00> : vector<2xf32>
    %119 = vector.multi_reduction <add>, %118, %cst_75 [1] : vector<2x128xf32> to vector<2xf32>
    %120 = vector.shape_cast %119 : vector<2xf32> to vector<2x1xf32>
    %121 = vector.broadcast %120 : vector<2x1xf32> to vector<2x128xf32>
    %122 = arith.divf %118, %121 : vector<2x128xf32>
    %c4_i32_76 = arith.constant 4 : i32
    %123 = vector.broadcast %c4_i32_76 : i32 to vector<2x128xi32>
    %124 = arith.cmpi eq, %107, %123 : vector<2x128xi32>
    %cst_77 = arith.constant 0.000000e+00 : f32
    %125 = vector.broadcast %cst_77 : f32 to vector<2x128xf32>
    %126 = arith.select %124, %106, %125 : vector<2x128xi1>, vector<2x128xf32>
    %127 = arith.addf %122, %126 : vector<2x128xf32>
    %c5_i32 = arith.constant 5 : i32
    %128 = vector.broadcast %c5_i32 : i32 to vector<2x128xi32>
    %129 = arith.cmpi eq, %107, %128 : vector<2x128xi32>
    %cst_78 = arith.constant 0.000000e+00 : f32
    %130 = vector.shape_cast %109 : vector<2x1xf32> to vector<2x1xf32>
    %131 = vector.broadcast %130 : vector<2x1xf32> to vector<2x128xf32>
    %132 = vector.broadcast %cst_78 : f32 to vector<2x128xf32>
    %133 = arith.select %129, %131, %132 : vector<2x128xi1>, vector<2x128xf32>
    %134 = arith.addf %127, %133 : vector<2x128xf32>
    %c0_79 = arith.constant 0 : index
    %c0_80 = arith.constant 0 : index
    %135 = vector.load %arg18[%c0_79, %c0_80] : memref<2x128xf32, #tpu.memory_space<vmem>>, vector<2x128xf32>
    tpu.vector_store %arg18[%c0_79, %c0_80], %134 {strides = array<i32>} : memref<2x128xf32, #tpu.memory_space<vmem>>, vector<2x128xf32>,
    %c0_81 = arith.constant 0 : index
    %c0_82 = arith.constant 0 : index
    %136 = vector.load %arg16[%c0_81, %c0_82] : memref<1x128xf32, #tpu.memory_space<vmem>>, vector<1x128xf32>
    %137 = vector.broadcast %109 : vector<2x1xf32> to vector<2x128xf32>
    %138 = vector.broadcast %136 : vector<1x128xf32> to vector<2x128xf32>
    %139 = arith.mulf %137, %138 : vector<2x128xf32>
    %c0_83 = arith.constant 0 : index
    %c0_84 = arith.constant 0 : index
    %140 = vector.load %arg17[%c0_83, %c0_84] : memref<1x128xf32, #tpu.memory_space<vmem>>, vector<1x128xf32>
    %141 = vector.broadcast %140 : vector<1x128xf32> to vector<2x128xf32>
    %142 = arith.addf %139, %141 : vector<2x128xf32>
    %143 = arith.mulf %142, %101 : vector<2x128xf32>
    %144 = vector.shape_cast %52 : vector<2x128xf32> to vector<2x128x1xf32>
    %145 = vector.shape_cast %143 : vector<2x128xf32> to vector<2x1x128xf32>
    %146 = vector.broadcast %144 : vector<2x128x1xf32> to vector<2x128x128xf32>
    %147 = vector.broadcast %145 : vector<2x1x128xf32> to vector<2x128x128xf32>
    %148 = arith.mulf %146, %147 : vector<2x128x128xf32>
    %149 = arith.addf %53, %148 : vector<2x128x128xf32>
    %cst_85 = arith.constant -2.000000e+00 : f32
    %cst_86 = arith.constant 2.000000e+00 : f32
    %150 = vector.broadcast %cst_85 : f32 to vector<2x128x128xf32>
    %151 = arith.maximumf %150, %149 : vector<2x128x128xf32>
    %152 = vector.broadcast %cst_86 : f32 to vector<2x128x128xf32>
    %153 = arith.minimumf %152, %151 : vector<2x128x128xf32>
    %c0_87 = arith.constant 0 : index
    %c0_88 = arith.constant 0 : index
    %c0_89 = arith.constant 0 : index
    %154 = vector.load %arg20[%c0_87, %c0_88, %c0_89] : memref<2x128x128xf32, #tpu.memory_space<vmem>>, vector<2x128x128xf32>
    tpu.vector_store %arg20[%c0_87, %c0_88, %c0_89], %153 {strides = array<i32>} : memref<2x128x128xf32, #tpu.memory_space<vmem>>, vector<2x128x128xf32>,
    %c0_90 = arith.constant 0 : index
    %c0_91 = arith.constant 0 : index
    %155 = vector.load %arg19[%c0_90, %c0_91] : memref<2x128xf32, #tpu.memory_space<vmem>>, vector<2x128xf32>
    tpu.vector_store %arg19[%c0_90, %c0_91], %101 {strides = array<i32>} : memref<2x128xf32, #tpu.memory_space<vmem>>, vector<2x128xf32>,
    return
  }
}

</mosaic_0001>

<bundles_post_ra>
// kernel: tpu_custom_call.1
= control target key start
LH: loop header
LB: loop body
LE: loop exit
PB: predicated region body
PF: predicated region fallthrough
CT: control target
= control target key end

     0   :  { %s4273_s0 = inlined_call_operand.vmem [shape: f32[16,128], index: 0, kind: input, shape index: {}]   ;;  %s4274_s1 = inlined_call_operand.vmem [shape: f32[128,128], index: 1, kind: input, shape index: {}]   ;;  %s4275_s2 = inlined_call_operand.vmem [shape: f32[1,128], index: 2, kind: input, shape index: {}]   ;;  %s4276_s3 = inlined_call_operand.vmem [shape: f32[8,128,64], index: 3, kind: input, shape index: {}]   ;;  %s4277_s4 = inlined_call_operand.vmem [shape: f32[1,64], index: 4, kind: input, shape index: {}]   ;;  %s4278_s5 = inlined_call_operand.vmem [shape: f32[2,128], index: 5, kind: input, shape index: {}]   ;;  %s4279_s6 = inlined_call_operand.vmem [shape: f32[2,128], index: 6, kind: input, shape index: {}]   ;;  %s4280_s7 = inlined_call_operand.hbm [shape: f32[2,128,128], index: 7, kind: input, shape index: {}, may-alias: {7,20}]   ;;  %s4281_s8 = inlined_call_operand.vmem [shape: f32[128,128], index: 8, kind: input, shape index: {}]   ;;  %s4282_s9 = inlined_call_operand.vmem [shape: f32[1,128], index: 9, kind: input, shape index: {}]   ;;  %s4283_s10 = inlined_call_operand.vmem [shape: f32[128,128], index: 10, kind: input, shape index: {}]   ;;  %s4284_s11 = inlined_call_operand.vmem [shape: f32[128,128], index: 11, kind: input, shape index: {}]   ;;  %s4285_s12 = inlined_call_operand.vmem [shape: f32[1,128], index: 12, kind: input, shape index: {}]   ;;  %s4286_s13 = inlined_call_operand.vmem [shape: f32[1,128], index: 13, kind: input, shape index: {}]   ;;  %s4287_s14 = inlined_call_operand.vmem [shape: f32[128,128], index: 14, kind: input, shape index: {}]   ;;  %s4288_s15 = inlined_call_operand.vmem [shape: f32[1,128], index: 15, kind: input, shape index: {}]   ;;  %s4289_s16 = inlined_call_operand.vmem [shape: f32[1,128], index: 16, kind: input, shape index: {}]   ;;  %s4290_s17 = inlined_call_operand.vmem [shape: f32[1,128], index: 17, kind: input, shape index: {}]   ;;  %s4291_s18 = inlined_call_operand.hbm [shape: f32[2,128], index: 18, kind: output, shape index: {0}]   ;;  %s4292_s19 = inlined_call_operand.hbm [shape: f32[2,128], index: 19, kind: output, shape index: {1}]   ;;  %s4293_s20 = inlined_call_operand.hbm [shape: f32[2,128,128], index: 20, kind: output, shape index: {2}, may-alias: {7,20}]  }
   0x1   :  { %4326 = sst [smem:[#allocation39_spill]] %s4273_s0 }
   0x2   :  { %4327 = sst [smem:[#allocation40_spill]] %s4274_s1 }
   0x3   :  { %4328 = sst [smem:[#allocation41_spill]] %s4275_s2 }
   0x4   :  { %4329 = sst [smem:[#allocation42_spill]] %s4276_s3 }
   0x5   :  { %4330 = sst [smem:[#allocation43_spill]] %s4277_s4 }
   0x6   :  { %26 = vsyncpa [#allocation4], 0 }
   0x7   :  { %27 = vsyncpa [#allocation5], 0 }
   0x8   :  { %28 = vsyncpa [#allocation8], 0  ;;  %s2988_s1 = smov [#allocation3]   ;;  %s2894_s2 = scalar_lea.hbm %s4280_s7, 4096 }
   0x9   :  { %s48_s22 = sshll.u32 %s2988_s1, 4  ;;  %p2895_p0 = scmp.ne.s32.totalorder %s4280_s7, %s2894_s2  ;;  %s49_s22 = int_to_ptr.vmem [resolvable:$true] %s48_s22 }
   0xa   :  { %p2898_p1 = scmp.lt.u32.totalorder %s2894_s2, %s4280_s7 }
   0xc   :  { %p2900_p2 = pnand %p2898_p1, %p2895_p0 }
   0xe   :  { %2903 = shalt.err (!%p2900_p2)
}
   0xf   :  { %s2904_s28 = scalar_lea.vmem %s49_s22, 4096  ;;  %p2909_p4 = scmp.lt.s32.totalorder %s49_s22, %s49_s22 }
  0x10   :  { %p2905_p3 = scmp.ne.s32.totalorder %s49_s22, %s2904_s28  ;;  %p2910_p5 = scmp.lt.s32.totalorder %s2904_s28, %s2904_s28 }
  0x12   :  { %p2911_p6 = por %p2910_p5, %p2909_p4 }
  0x14   :  { %p2912_p7 = pnand %p2911_p6, %p2905_p3 }
  0x16   :  { %2915 = shalt.err (!%p2912_p7)
}
  0x17   :  { %s2989_s4 = smov 128   ;;  %s2990_s29 = smov 8  }
  0x18   :  { %54 = dma.hbm_to_vmem [thread:$0]  %s4280_s7, 4096, %s49_s22, [#allocation4], %s2989_s4, %s2989_s4, %s2990_s29  }
  0x19   :  { %2982 = dma.done.wait [#allocation4], 4096  }
  0x1a   :  { %2983 = vsyncadd [#allocation4], 4294963200  ;;  %v4298_v0 = vmov 0.0|0.0   ;;  %s4331_s23 = sld [smem:[#allocation40_spill]]  ;;  %s4332_s1 = sld [smem:[#allocation39_spill]]  ;;  %vm2992_vm0 = vmmov 0  }
  0x1b   :  { %2603 = vmatprep.subr.bf16.mxu1 %v4298_v0  ;;  %s4333_s22 = sld [smem:[#allocation42_spill]]  ;;  %s4334_s26 = sld [smem:[#allocation41_spill]]  ;;  %vm939_vm1 = vcmask 517120   ;;  %vm1309_vm2 = vcmask 1041409   ;;  %vm1383_vm3 = vcmask 1041408  }
  0x1c   :  { %s4335_s30 = sld [smem:[#allocation43_spill]] }
  0x20   :  { %v80_v1 = vld [vmem:[%s4331_s23] sm:$0xff]  ;;  %v81_v2 = vld [vmem:[%s4331_s23 + $0x8] sm:$0xff]  ;;  %v82_v3 = vld [vmem:[%s4331_s23 + $0x10] sm:$0xff] }
  0x21   :  { %v2571_v4 = vpack.c.bf16 %v81_v2, %v80_v1  ;;  %v83_v5 = vld [vmem:[%s4331_s23 + $0x18] sm:$0xff]  ;;  %v84_v7 = vld [vmem:[%s4331_s23 + $0x20] sm:$0xff]  ;;  %v85_v8 = vld [vmem:[%s4331_s23 + $0x28] sm:$0xff] }
  0x22   :  { %v2575_v6 = vpack.c.bf16 %v83_v5, %v82_v3  ;;  %v2579_v9 = vpack.c.bf16 %v85_v8, %v84_v7  ;;  %v78_v10 = vld [vmem:[%s4332_s1] sm:$0xff]  ;;  %v86_v11 = vld [vmem:[%s4331_s23 + $0x30] sm:$0xff]  ;;  %v87_v12 = vld [vmem:[%s4331_s23 + $0x38] sm:$0xff] }
  0x23   :  { %2572 = vmatprep.subr.bf16.mxu0 %v2571_v4  ;;  %2183 = vmatprep.mubr.f32.mxu0 %v78_v10  ;;  %v1795_v13 = vld [vmem:[%s4333_s22 + $0x80] sm:$0xff]  ;;  %v1796_v14 = vld [vmem:[%s4333_s22 + $0x88] sm:$0xff]  ;;  %v1797_v16 = vld [vmem:[%s4333_s22 + $0x90] sm:$0xff]  ;;  %v2583_v18 = vpack.c.bf16 %v87_v12, %v86_v11  ;;  %v2993_v12 = vmov 0.0  }
  0x24   :  { %2574 = vmatpush3.bf16.msra.mxu0 %v2571_v4  ;;  %v2604_v15 = vpack.c.bf16 %v1796_v14, %v1795_v13  ;;  %v1798_v17 = vld [vmem:[%s4333_s22 + $0x98] sm:$0xff]  ;;  %v88_v19 = vld [vmem:[%s4331_s23 + $0x40] sm:$0xff]  ;;  %v89_v20 = vld [vmem:[%s4331_s23 + $0x48] sm:$0xff]  ;;  %2218 = vmatprep.mubr.msk.f32.mxu1 %vm2992_vm0, %v2993_v12 }
  0x25   :  { %2576 = vmatprep.subr.bf16.mxu0 %v2575_v6  ;;  %v2607_v21 = vpack.c.bf16 %v1798_v17, %v1797_v16  ;;  %v1799_v22 = vld [vmem:[%s4333_s22 + $0xa0] sm:$0xff]  ;;  %v1800_v23 = vld [vmem:[%s4333_s22 + $0xa8] sm:$0xff]  ;;  %v2587_v24 = vpack.c.bf16 %v89_v20, %v88_v19  ;;  %v90_v25 = vld [vmem:[%s4331_s23 + $0x50] sm:$0xff] }
  0x26   :  { %2605 = vmatpush3.bf16.msra.mxu1 %v2604_v15  ;;  %v91_v26 = vld [vmem:[%s4331_s23 + $0x58] sm:$0xff]  ;;  %v2610_v27 = vpack.c.bf16 %v1800_v23, %v1799_v22  ;;  %v1801_v28 = vld [vmem:[%s4333_s22 + $0xb0] sm:$0xff]  ;;  %v92_v31 = vld [vmem:[%s4331_s23 + $0x60] sm:$0xff] }
  0x27   :  { %2606 = vmatprep.subr.bf16.mxu1 %v4298_v0  ;;  %v1802_v29 = vld [vmem:[%s4333_s22 + $0xb8] sm:$0xff]  ;;  %v2591_v30 = vpack.c.bf16 %v91_v26, %v90_v25  ;;  %v93_v32 = vld [vmem:[%s4331_s23 + $0x68] sm:$0xff]  ;;  %v1803_v34 = vld [vmem:[%s4333_s22 + $0xc0] sm:$0xff] }
  0x28   :  { %2578 = vmatpush3.bf16.msra.mxu0 %v2575_v6  ;;  %v2613_v33 = vpack.c.bf16 %v1802_v29, %v1801_v28  ;;  %v1804_v35 = vld [vmem:[%s4333_s22 + $0xc8] sm:$0xff]  ;;  %v2595_v36 = vpack.c.bf16 %v93_v32, %v92_v31  ;;  %v94_v37 = vld [vmem:[%s4331_s23 + $0x70] sm:$0xff]  ;;  %v95_v38 = vld [vmem:[%s4331_s23 + $0x78] sm:$0xff] }
  0x29   :  { %2580 = vmatprep.subr.bf16.mxu0 %v2579_v9  ;;  %v2616_v39 = vpack.c.bf16 %v1804_v35, %v1803_v34  ;;  %v1805_v40 = vld [vmem:[%s4333_s22 + $0xd0] sm:$0xff]  ;;  %v1806_v41 = vld [vmem:[%s4333_s22 + $0xd8] sm:$0xff]  ;;  %v2599_v42 = vpack.c.bf16 %v95_v38, %v94_v37  ;;  %v180_v44 = vld [vmem:[%s4333_s22] sm:$0xff] }
  0x2a   :  { %2608 = vmatpush3.bf16.msra.mxu1 %v2607_v21  ;;  %v2619_v43 = vpack.c.bf16 %v1806_v41, %v1805_v40  ;;  %v181_v45 = vld [vmem:[%s4333_s22 + $0x8] sm:$0xff]  ;;  %v182_v48 = vld [vmem:[%s4333_s22 + $0x10] sm:$0xff]  ;;  %v183_v49 = vld [vmem:[%s4333_s22 + $0x18] sm:$0xff] }
  0x2b   :  { %2609 = vmatprep.subr.bf16.mxu1 %v4298_v0  ;;  %v79_v46 = vld [vmem:[%s4332_s1 + $0x8] sm:$0xff]  ;;  %v2628_v47 = vpack.c.bf16 %v181_v45, %v180_v44  ;;  %v2631_v50 = vpack.c.bf16 %v183_v49, %v182_v48  ;;  %v184_v51 = vld [vmem:[%s4333_s22 + $0x20] sm:$0xff]  ;;  %v186_v54 = vld [vmem:[%s4333_s22 + $0x30] sm:$0xff] }
  0x2c   :  { %2582 = vmatpush3.bf16.msra.mxu0 %v2579_v9  ;;  %v185_v52 = vld [vmem:[%s4333_s22 + $0x28] sm:$0xff]  ;;  %v187_v55 = vld [vmem:[%s4333_s22 + $0x38] sm:$0xff]  ;;  %v188_v57 = vld [vmem:[%s4333_s22 + $0x40] sm:$0xff] }
  0x2d   :  { %2584 = vmatprep.subr.bf16.mxu0 %v2583_v18  ;;  %v2634_v53 = vpack.c.bf16 %v185_v52, %v184_v51  ;;  %v2637_v56 = vpack.c.bf16 %v187_v55, %v186_v54  ;;  %v189_v58 = vld [vmem:[%s4333_s22 + $0x48] sm:$0xff]  ;;  %v190_v60 = vld [vmem:[%s4333_s22 + $0x50] sm:$0xff]  ;;  %v191_v61 = vld [vmem:[%s4333_s22 + $0x58] sm:$0xff] }
  0x2e   :  { %2611 = vmatpush3.bf16.msra.mxu1 %v2610_v27  ;;  %v2640_v59 = vpack.c.bf16 %v189_v58, %v188_v57  ;;  %v2643_v62 = vpack.c.bf16 %v191_v61, %v190_v60  ;;  %v192_v63 = vld [vmem:[%s4333_s22 + $0x60] sm:$0xff]  ;;  %v193_v1 = vld [vmem:[%s4333_s22 + $0x68] sm:$0xff]  ;;  %v194_v6 = vld [vmem:[%s4333_s22 + $0x70] sm:$0xff] }
  0x2f   :  { %2612 = vmatprep.subr.bf16.mxu1 %v4298_v0  ;;  %v2646_v2 = vpack.c.bf16 %v193_v1, %v192_v63  ;;  %v1807_v3 = vld [vmem:[%s4333_s22 + $0xe0] sm:$0xff]  ;;  %v1808_v4 = vld [vmem:[%s4333_s22 + $0xe8] sm:$0xff]  ;;  %v195_v7 = vld [vmem:[%s4333_s22 + $0x78] sm:$0xff] }
  0x30   :  { %2586 = vmatpush3.bf16.msra.mxu0 %v2583_v18  ;;  %v2622_v5 = vpack.c.bf16 %v1808_v4, %v1807_v3  ;;  %v2649_v8 = vpack.c.bf16 %v195_v7, %v194_v6  ;;  %v1809_v9 = vld [vmem:[%s4333_s22 + $0xf0] sm:$0xff]  ;;  %v1810_v10 = vld [vmem:[%s4333_s22 + $0xf8] sm:$0xff]  ;;  %v3294_v13 = vld [vmem:[%s4334_s26] ss:$0 sm:$0xff] }
  0x31   :  { %2588 = vmatprep.subr.bf16.mxu0 %v2587_v24  ;;  %v2625_v11 = vpack.c.bf16 %v1810_v10, %v1809_v9  ;;  %v1827_v15 = vld [vmem:[%s4333_s22 + $0x180] sm:$0xff]  ;;  %v1828_v16 = vld [vmem:[%s4333_s22 + $0x188] sm:$0xff]  ;;  %v1829_v23 = vld [vmem:[%s4333_s22 + $0x190] sm:$0xff] }
  0x32   :  { %2614 = vmatpush3.bf16.msra.mxu1 %v2613_v33  ;;  %v1811_v19 = vld [vmem:[%s4333_s22 + $0x100] sm:$0xff]  ;;  %v1812_v20 = vld [vmem:[%s4333_s22 + $0x108] sm:$0xff]  ;;  %v2676_v21 = vpack.c.bf16 %v1828_v16, %v1827_v15  ;;  %v1813_v27 = vld [vmem:[%s4333_s22 + $0x110] sm:$0xff] }
  0x33   :  { %2615 = vmatprep.subr.bf16.mxu1 %v4298_v0  ;;  %v2652_v25 = vpack.c.bf16 %v1812_v20, %v1811_v19  ;;  %v1814_v28 = vld [vmem:[%s4333_s22 + $0x118] sm:$0xff]  ;;  %v1832_v31 = vld [vmem:[%s4333_s22 + $0x1a8] sm:$0xff]  ;;  %v1815_v33 = vld [vmem:[%s4333_s22 + $0x120] sm:$0xff] }
  0x34   :  { %2590 = vmatpush3.bf16.msra.mxu0 %v2587_v24  ;;  %v1830_v24 = vld [vmem:[%s4333_s22 + $0x198] sm:$0xff]  ;;  %v2655_v32 = vpack.c.bf16 %v1814_v28, %v1813_v27  ;;  %v1816_v34 = vld [vmem:[%s4333_s22 + $0x128] sm:$0xff]  ;;  %v1819_v45 = vld [vmem:[%s4333_s22 + $0x140] sm:$0xff] }
  0x35   :  { %2592 = vmatprep.subr.bf16.mxu0 %v2591_v30  ;;  %v2679_v29 = vpack.c.bf16 %v1830_v24, %v1829_v23  ;;  %v1834_v37 = vld [vmem:[%s4333_s22 + $0x1b8] sm:$0xff]  ;;  %v2658_v38 = vpack.c.bf16 %v1816_v34, %v1815_v33  ;;  %v1837_v48 = vld [vmem:[%s4333_s22 + $0x1d0] sm:$0xff]  ;;  %v1839_v54 = vld [vmem:[%s4333_s22 + $0x1e0] sm:$0xff] }
  0x36   :  { %2617 = vmatpush3.bf16.msra.mxu1 %v2616_v39  ;;  %v1817_v39 = vld [vmem:[%s4333_s22 + $0x130] sm:$0xff]  ;;  %v1818_v40 = vld [vmem:[%s4333_s22 + $0x138] sm:$0xff]  ;;  %v1840_v55 = vld [vmem:[%s4333_s22 + $0x1e8] sm:$0xff] }
  0x37   :  { %2618 = vmatprep.subr.bf16.mxu1 %v4298_v0  ;;  %v2661_v44 = vpack.c.bf16 %v1818_v40, %v1817_v39  ;;  %v1838_v49 = vld [vmem:[%s4333_s22 + $0x1d8] sm:$0xff]  ;;  %v1821_v51 = vld [vmem:[%s4333_s22 + $0x150] sm:$0xff]  ;;  %v1823_v57 = vld [vmem:[%s4333_s22 + $0x160] sm:$0xff] }
  0x38   :  { %2594 = vmatpush3.bf16.msra.mxu0 %v2591_v30  ;;  %v1831_v30 = vld [vmem:[%s4333_s22 + $0x1a0] sm:$0xff]  ;;  %v1822_v52 = vld [vmem:[%s4333_s22 + $0x158] sm:$0xff]  ;;  %v1824_v58 = vld [vmem:[%s4333_s22 + $0x168] sm:$0xff] }
  0x39   :  { %2596 = vmatprep.subr.bf16.mxu0 %v2595_v36  ;;  %v2682_v35 = vpack.c.bf16 %v1832_v31, %v1831_v30  ;;  %v1841_v60 = vld [vmem:[%s4333_s22 + $0x1f0] sm:$0xff]  ;;  %v1842_v61 = vld [vmem:[%s4333_s22 + $0x1f8] sm:$0xff]  ;;  %v1859_v3 = vld [vmem:[%s4333_s22 + $0x280] sm:$0xff] }
  0x3a   :  { %2620 = vmatpush3.bf16.msra.mxu1 %v2619_v43  ;;  %v1836_v43 = vld [vmem:[%s4333_s22 + $0x1c8] sm:$0xff]  ;;  %v1825_v63 = vld [vmem:[%s4333_s22 + $0x170] sm:$0xff]  ;;  %v1826_v1 = vld [vmem:[%s4333_s22 + $0x178] sm:$0xff] }
  0x3b   :  { %2621 = vmatprep.subr.bf16.mxu1 %v4298_v0  ;;  %v1860_v4 = vld [vmem:[%s4333_s22 + $0x288] sm:$0xff]  ;;  %v1843_v6 = vld [vmem:[%s4333_s22 + $0x200] sm:$0xff]  ;;  %v1861_v10 = vld [vmem:[%s4333_s22 + $0x290] sm:$0xff] }
  0x3c   :  { %2598 = vmatpush3.bf16.msra.mxu0 %v2595_v36  ;;  %v1833_v36 = vld [vmem:[%s4333_s22 + $0x1b0] sm:$0xff]  ;;  %v1844_v7 = vld [vmem:[%s4333_s22 + $0x208] sm:$0xff]  ;;  %v1863_v20 = vld [vmem:[%s4333_s22 + $0x2a0] sm:$0xff] }
  0x3d   :  { %2600 = vmatprep.subr.bf16.mxu0 %v2599_v42  ;;  %v2685_v41 = vpack.c.bf16 %v1834_v37, %v1833_v36  ;;  %v2700_v15 = vpack.c.bf16 %v1844_v7, %v1843_v6  ;;  %v1847_v23 = vld [vmem:[%s4333_s22 + $0x220] sm:$0xff]  ;;  %v1848_v24 = vld [vmem:[%s4333_s22 + $0x228] sm:$0xff]  ;;  %v1866_v27 = vld [vmem:[%s4333_s22 + $0x2b8] sm:$0xff] }
  0x3e   :  { %2623 = vmatpush3.bf16.msra.mxu1 %v2622_v5  ;;  %v2673_v5 = vpack.c.bf16 %v1826_v1, %v1825_v63  ;;  %v2706_v28 = vpack.c.bf16 %v1848_v24, %v1847_v23  ;;  %v1850_v30 = vld [vmem:[%s4333_s22 + $0x238] sm:$0xff]  ;;  %v1868_v33 = vld [vmem:[%s4333_s22 + $0x2c8] sm:$0xff]  ;;  %v1893_v63 = vld [vmem:[%s4333_s22 + $0x390] sm:$0xff] }
  0x3f   :  { %2624 = vmatprep.subr.bf16.mxu1 %v4298_v0  ;;  %v1852_v36 = vld [vmem:[%s4333_s22 + $0x248] sm:$0xff]  ;;  %v1870_v39 = vld [vmem:[%s4333_s22 + $0x2d8] sm:$0xff]  ;;  %v1895_v6 = vld [vmem:[%s4333_s22 + $0x3a0] sm:$0xff] }
  0x40   :  { %2602 = vmatpush3.bf16.msra.mxu0 %v2599_v42  ;;  %v1835_v42 = vld [vmem:[%s4333_s22 + $0x1c0] sm:$0xff]  ;;  %v1894_v1 = vld [vmem:[%s4333_s22 + $0x398] sm:$0xff]  ;;  %v1896_v7 = vld [vmem:[%s4333_s22 + $0x3a8] sm:$0xff] }
  0x41   :  { %2627 = vmatprep.subr.bf16.mxu0 %v4298_v0  ;;  %v1883_v24 = vld [vmem:[%s4333_s22 + $0x340] sm:$0xff] }
  0x42   :  { %2626 = vmatpush3.bf16.msra.mxu1 %v2625_v11  ;;  %v1862_v11 = vld [vmem:[%s4333_s22 + $0x298] sm:$0xff] }
  0x43   :  { %2184 = vmatmul.mubr.f32.vlgmr.msra.gmra.mrb[0].mxu0 %v79_v46  ;;  %2651 = vmatprep.subr.bf16.mxu1 %v4298_v0  ;;  %v1820_v46 = vld [vmem:[%s4333_s22 + $0x148] sm:$0xff]  ;;  %v2727_v19 = vpack.c.bf16 %v1862_v11, %v1861_v10  ;;  %v2778_v11 = vpack.c.bf16 %v1896_v7, %v1895_v6  ;;  %v957_v6 = vld [vmem:[%s4281_s8 + $0x78] sm:$0xff] }
  0x44   :  { %2629 = vmatpush3.bf16.msra.mxu0 %v2628_v47  ;;  %2253 = vmatprep.mubr.msk.f32.mxu0 %vm2992_vm0, %v2993_v12  ;;  %v2688_v47 = vpack.c.bf16 %v1836_v43, %v1835_v42  ;;  %v1854_v42 = vld [vmem:[%s4333_s22 + $0x258] sm:$0xff]  ;;  %v1880_v10 = vld [vmem:[%s4333_s22 + $0x328] sm:$0xff] }
  0x45   :  { %2630 = vmatprep.subr.bf16.mxu0 %v4298_v0 }
  0x48   :  { %2632 = vmatpush3.bf16.msra.mxu0 %v2631_v50  ;;  %v2664_v50 = vpack.c.bf16 %v1820_v46, %v1819_v45  ;;  %v1872_v45 = vld [vmem:[%s4333_s22 + $0x2e8] sm:$0xff] }
  0x49   :  { %2633 = vmatprep.subr.bf16.mxu0 %v4298_v0 }
  0x4c   :  { %2635 = vmatpush3.bf16.msra.mxu0 %v2634_v53  ;;  %v2691_v53 = vpack.c.bf16 %v1838_v49, %v1837_v48  ;;  %v1856_v48 = vld [vmem:[%s4333_s22 + $0x268] sm:$0xff] }
  0x4d   :  { %2636 = vmatprep.subr.bf16.mxu0 %v4298_v0 }
  0x50   :  { %2638 = vmatpush3.bf16.msra.mxu0 %v2637_v56  ;;  %v2667_v56 = vpack.c.bf16 %v1822_v52, %v1821_v51  ;;  %v1873_v51 = vld [vmem:[%s4333_s22 + $0x2f0] sm:$0xff]  ;;  %v1874_v52 = vld [vmem:[%s4333_s22 + $0x2f8] sm:$0xff] }
  0x51   :  { %2639 = vmatprep.subr.bf16.mxu0 %v4298_v0 }
  0x54   :  { %2641 = vmatpush3.bf16.msra.mxu0 %v2640_v59  ;;  %v2694_v59 = vpack.c.bf16 %v1840_v55, %v1839_v54  ;;  %v1857_v54 = vld [vmem:[%s4333_s22 + $0x270] sm:$0xff] }
  0x55   :  { %2642 = vmatprep.subr.bf16.mxu0 %v4298_v0 }
  0x58   :  { %2644 = vmatpush3.bf16.msra.mxu0 %v2643_v62  ;;  %v2670_v62 = vpack.c.bf16 %v1824_v58, %v1823_v57  ;;  %v1892_v57 = vld [vmem:[%s4333_s22 + $0x388] sm:$0xff] }
  0x59   :  { %2645 = vmatprep.subr.bf16.mxu0 %v4298_v0 }
  0x5c   :  { %2647 = vmatpush3.bf16.msra.mxu0 %v2646_v2  ;;  %v2697_v2 = vpack.c.bf16 %v1842_v61, %v1841_v60  ;;  %v1876_v60 = vld [vmem:[%s4333_s22 + $0x308] sm:$0xff] }
  0x5d   :  { %2648 = vmatprep.subr.bf16.mxu0 %v4298_v0 }
  0x60   :  { %2650 = vmatpush3.bf16.msra.mxu0 %v2649_v8  ;;  %v2724_v8 = vpack.c.bf16 %v1860_v4, %v1859_v3  ;;  %v1877_v3 = vld [vmem:[%s4333_s22 + $0x310] sm:$0xff]  ;;  %v1878_v4 = vld [vmem:[%s4333_s22 + $0x318] sm:$0xff] }
  0x61   :  { %2675 = vmatprep.subr.bf16.mxu0 %v4298_v0 }
 0x116   :  { %v3296_v14 = vpop.f32.mrb[0].mxu0 }
 0x117   :  { %v169_v17 = vpop.f32.mrb[1].mxu0 }
 0x118   :  { %v170_v18 = vadd.f32 %v3294_v13, %v169_v17  ;;  %v1845_v17 = vld [vmem:[%s4333_s22 + $0x210] sm:$0xff] }
 0x11a   :  { %v3311_v22 = vmax.f32 %v170_v18, 0.0  ;;  %v1846_v18 = vld [vmem:[%s4333_s22 + $0x218] sm:$0xff] }
 0x11c   :  { %2254 = vmatmul.mubr.f32.vlgmr.msra.gmra.mrb[2].mxu0 %v3311_v22  ;;  %v214_v26 = vrot.slane %v3311_v22, 2  ;;  %v463_v9 = vrot.slane %v3311_v22, 6  ;;  %v373_v16 = vrot.slane %v3311_v22, 4  ;;  %v2703_v22 = vpack.c.bf16 %v1846_v18, %v1845_v17  ;;  %v1881_v18 = vld [vmem:[%s4333_s22 + $0x330] sm:$0xff] }
 0x11d   :  { %2677 = vmatpush3.bf16.msra.mxu0 %v2676_v21  ;;  %2323 = vmatprep.mubr.msk.f32.mxu0 %vm2992_vm0, %v2993_v12  ;;  %v1864_v21 = vld [vmem:[%s4333_s22 + $0x2a8] sm:$0xff] }
 0x11e   :  { %2219 = vmatmul.mubr.f32.vlgmr.msra.gmra.mrb[0].mxu1 %v214_v26  ;;  %2678 = vmatprep.subr.bf16.mxu0 %v4298_v0  ;;  %v1865_v26 = vld [vmem:[%s4333_s22 + $0x2b0] sm:$0xff] }
 0x11f   :  { %2653 = vmatpush3.bf16.msra.mxu1 %v2652_v25  ;;  %2288 = vmatprep.mubr.msk.f32.mxu1 %vm2992_vm0, %v2993_v12  ;;  %v2730_v25 = vpack.c.bf16 %v1864_v21, %v1863_v20  ;;  %v2733_v31 = vpack.c.bf16 %v1866_v27, %v1865_v26  ;;  %v1899_v21 = vld [vmem:[%s4333_s22 + $0x3c0] sm:$0xff]  ;;  %v1901_v27 = vld [vmem:[%s4333_s22 + $0x3d0] sm:$0xff] }
 0x120   :  { %2654 = vmatprep.subr.bf16.mxu1 %v4298_v0 }
 0x121   :  { %2680 = vmatpush3.bf16.msra.mxu0 %v2679_v29  ;;  %v1849_v29 = vld [vmem:[%s4333_s22 + $0x230] sm:$0xff] }
 0x122   :  { %2681 = vmatprep.subr.bf16.mxu0 %v4298_v0  ;;  %v2709_v34 = vpack.c.bf16 %v1850_v30, %v1849_v29  ;;  %v1885_v30 = vld [vmem:[%s4333_s22 + $0x350] sm:$0xff] }
 0x123   :  { %2656 = vmatpush3.bf16.msra.mxu1 %v2655_v32  ;;  %v1867_v32 = vld [vmem:[%s4333_s22 + $0x2c0] sm:$0xff] }
 0x124   :  { %2657 = vmatprep.subr.bf16.mxu1 %v4298_v0  ;;  %v2736_v37 = vpack.c.bf16 %v1868_v33, %v1867_v32  ;;  %v1903_v33 = vld [vmem:[%s4333_s22 + $0x3e0] sm:$0xff] }
 0x125   :  { %2683 = vmatpush3.bf16.msra.mxu0 %v2682_v35  ;;  %v1851_v35 = vld [vmem:[%s4333_s22 + $0x240] sm:$0xff] }
 0x126   :  { %2684 = vmatprep.subr.bf16.mxu0 %v4298_v0  ;;  %v2712_v40 = vpack.c.bf16 %v1852_v36, %v1851_v35  ;;  %v1887_v36 = vld [vmem:[%s4333_s22 + $0x360] sm:$0xff] }
 0x127   :  { %2659 = vmatpush3.bf16.msra.mxu1 %v2658_v38  ;;  %v1869_v38 = vld [vmem:[%s4333_s22 + $0x2d0] sm:$0xff] }
 0x128   :  { %2660 = vmatprep.subr.bf16.mxu1 %v4298_v0  ;;  %v2739_v43 = vpack.c.bf16 %v1870_v39, %v1869_v38  ;;  %v1905_v39 = vld [vmem:[%s4333_s22 + $0x3f0] sm:$0xff] }
 0x129   :  { %2686 = vmatpush3.bf16.msra.mxu0 %v2685_v41  ;;  %v1853_v41 = vld [vmem:[%s4333_s22 + $0x250] sm:$0xff] }
 0x12a   :  { %2687 = vmatprep.subr.bf16.mxu0 %v4298_v0  ;;  %v2715_v46 = vpack.c.bf16 %v1854_v42, %v1853_v41  ;;  %v1889_v42 = vld [vmem:[%s4333_s22 + $0x370] sm:$0xff] }
 0x12b   :  { %2662 = vmatpush3.bf16.msra.mxu1 %v2661_v44  ;;  %v1871_v44 = vld [vmem:[%s4333_s22 + $0x2e0] sm:$0xff] }
 0x12c   :  { %2663 = vmatprep.subr.bf16.mxu1 %v4298_v0  ;;  %v2742_v49 = vpack.c.bf16 %v1872_v45, %v1871_v44 }
 0x12d   :  { %2689 = vmatpush3.bf16.msra.mxu0 %v2688_v47  ;;  %v1855_v47 = vld [vmem:[%s4333_s22 + $0x260] sm:$0xff] }
 0x12e   :  { %2690 = vmatprep.subr.bf16.mxu0 %v4298_v0 }
 0x12f   :  { %2665 = vmatpush3.bf16.msra.mxu1 %v2664_v50  ;;  %v175_v50 = vadd.f32 %v3296_v14, %v3294_v13  ;;  %v1858_v13 = vld [vmem:[%s4333_s22 + $0x278] sm:$0xff]  ;;  %v2745_v14 = vpack.c.bf16 %v1874_v52, %v1873_v51 }
 0x130   :  { %2666 = vmatprep.subr.bf16.mxu1 %v4298_v0  ;;  %v2721_v58 = vpack.c.bf16 %v1858_v13, %v1857_v54  ;;  %v945_v52 = vld [vmem:[%s4281_s8 + $0x18] sm:$0xff]  ;;  %v946_v54 = vld [vmem:[%s4281_s8 + $0x20] sm:$0xff]  ;;  %v947_v13 = vld [vmem:[%s4281_s8 + $0x28] sm:$0xff] }
 0x131   :  { %2692 = vmatpush3.bf16.msra.mxu0 %v2691_v53  ;;  %v2718_v53 = vpack.c.bf16 %v1856_v48, %v1855_v47  ;;  %v3535_v55 = vmax.f32 %v175_v50, 0.0  ;;  %v942_v48 = vld [vmem:[%s4281_s8] sm:$0xff]  ;;  %v944_v50 = vld [vmem:[%s4281_s8 + $0x10] sm:$0xff] }
 0x132   :  { %2693 = vmatprep.subr.bf16.mxu0 %v4298_v0 }
 0x133   :  { %2668 = vmatpush3.bf16.msra.mxu1 %v2667_v56  ;;  %v1891_v56 = vld [vmem:[%s4333_s22 + $0x380] sm:$0xff]  ;;  %v732_v47 = vrot.slane %v3535_v55, 4 }
 0x134   :  { %2669 = vmatprep.subr.bf16.mxu1 %v4298_v0  ;;  %v2772_v61 = vpack.c.bf16 %v1892_v57, %v1891_v56  ;;  %v949_v56 = vld [vmem:[%s4281_s8 + $0x38] sm:$0xff] }
 0x135   :  { %2695 = vmatpush3.bf16.msra.mxu0 %v2694_v59  ;;  %v1875_v59 = vld [vmem:[%s4333_s22 + $0x300] sm:$0xff] }
 0x136   :  { %2696 = vmatprep.subr.bf16.mxu0 %v4298_v0 }
 0x137   :  { %2671 = vmatpush3.bf16.msra.mxu1 %v2670_v62  ;;  %v642_v62 = vrot.slane %v3535_v55, 2 }
 0x138   :  { %2672 = vmatprep.subr.bf16.mxu1 %v4298_v0 }
 0x139   :  { %2698 = vmatpush3.bf16.msra.mxu0 %v2697_v2  ;;  %v2748_v2 = vpack.c.bf16 %v1876_v60, %v1875_v59  ;;  %v951_v59 = vld [vmem:[%s4281_s8 + $0x48] sm:$0xff] }
 0x13a   :  { %2723 = vmatprep.subr.bf16.mxu0 %v4298_v0 }
 0x13b   :  { %2674 = vmatpush3.bf16.msra.mxu1 %v2673_v5  ;;  %v2775_v5 = vpack.c.bf16 %v1894_v1, %v1893_v63  ;;  %v954_v1 = vld [vmem:[%s4281_s8 + $0x60] sm:$0xff] }
 0x13c   :  { %2324 = vmatmul.mubr.f32.vlgmr.msra.gmra.mrb[4].mxu0 %v463_v9  ;;  %2699 = vmatprep.subr.bf16.mxu1 %v4298_v0  ;;  %v1879_v9 = vld [vmem:[%s4333_s22 + $0x320] sm:$0xff] }
 0x13d   :  { %2725 = vmatpush3.bf16.msra.mxu0 %v2724_v8  ;;  %2393 = vmatprep.mubr.msk.f32.mxu0 %vm2992_vm0, %v2993_v12  ;;  %v2751_v8 = vpack.c.bf16 %v1878_v4, %v1877_v3  ;;  %v2754_v17 = vpack.c.bf16 %v1880_v10, %v1879_v9  ;;  %v937_v3 = vld [vmem:[%s4278_s5] sm:$0x3] }
 0x13e   :  { %2289 = vmatmul.mubr.f32.vlgmr.msra.gmra.mrb[2].mxu1 %v373_v16  ;;  %2726 = vmatprep.subr.bf16.mxu0 %v4298_v0  ;;  %v1898_v16 = vld [vmem:[%s4333_s22 + $0x3b8] sm:$0xff]  ;;  %938 = vst [vmem:[#allocation2] sm:$0x3] %v937_v3 }
 0x13f   :  { %2701 = vmatpush3.bf16.msra.mxu1 %v2700_v15  ;;  %2358 = vmatprep.mubr.msk.f32.mxu1 %vm2992_vm0, %v2993_v12  ;;  %v1897_v15 = vld [vmem:[%s4333_s22 + $0x3b0] sm:$0xff] }
 0x140   :  { %2702 = vmatprep.subr.bf16.mxu1 %v4298_v0  ;;  %v2781_v20 = vpack.c.bf16 %v1898_v16, %v1897_v15  ;;  %v3734_v15 = vld [vmem:[%s4279_s6] sm:$0x3] }
 0x141   :  { %2728 = vmatpush3.bf16.msra.mxu0 %v2727_v19  ;;  %v1882_v19 = vld [vmem:[%s4333_s22 + $0x338] sm:$0xff] }
 0x142   :  { %2729 = vmatprep.subr.bf16.mxu0 %v4298_v0  ;;  %v2757_v23 = vpack.c.bf16 %v1882_v19, %v1881_v18 }
 0x143   :  { %2704 = vmatpush3.bf16.msra.mxu1 %v2703_v22  ;;  %v1900_v22 = vld [vmem:[%s4333_s22 + $0x3c8] sm:$0xff] }
 0x144   :  { %2705 = vmatprep.subr.bf16.mxu1 %v4298_v0  ;;  %v2784_v26 = vpack.c.bf16 %v1900_v22, %v1899_v21 }
 0x145   :  { %2731 = vmatpush3.bf16.msra.mxu0 %v2730_v25  ;;  %v1884_v25 = vld [vmem:[%s4333_s22 + $0x348] sm:$0xff] }
 0x146   :  { %2732 = vmatprep.subr.bf16.mxu0 %v4298_v0  ;;  %v2760_v29 = vpack.c.bf16 %v1884_v25, %v1883_v24 }
 0x147   :  { %2707 = vmatpush3.bf16.msra.mxu1 %v2706_v28  ;;  %v1902_v28 = vld [vmem:[%s4333_s22 + $0x3d8] sm:$0xff] }
 0x148   :  { %2708 = vmatprep.subr.bf16.mxu1 %v4298_v0  ;;  %v2787_v32 = vpack.c.bf16 %v1902_v28, %v1901_v27 }
 0x149   :  { %2734 = vmatpush3.bf16.msra.mxu0 %v2733_v31  ;;  %v1886_v31 = vld [vmem:[%s4333_s22 + $0x358] sm:$0xff] }
 0x14a   :  { %2735 = vmatprep.subr.bf16.mxu0 %v4298_v0  ;;  %v2763_v35 = vpack.c.bf16 %v1886_v31, %v1885_v30 }
 0x14b   :  { %2710 = vmatpush3.bf16.msra.mxu1 %v2709_v34  ;;  %v1904_v34 = vld [vmem:[%s4333_s22 + $0x3e8] sm:$0xff] }
 0x14c   :  { %2711 = vmatprep.subr.bf16.mxu1 %v4298_v0  ;;  %v2790_v38 = vpack.c.bf16 %v1904_v34, %v1903_v33 }
 0x14d   :  { %2737 = vmatpush3.bf16.msra.mxu0 %v2736_v37  ;;  %v1888_v37 = vld [vmem:[%s4333_s22 + $0x368] sm:$0xff] }
 0x14e   :  { %2738 = vmatprep.subr.bf16.mxu0 %v4298_v0  ;;  %v2766_v41 = vpack.c.bf16 %v1888_v37, %v1887_v36 }
 0x14f   :  { %2713 = vmatpush3.bf16.msra.mxu1 %v2712_v40  ;;  %v1906_v40 = vld [vmem:[%s4333_s22 + $0x3f8] sm:$0xff] }
 0x150   :  { %2714 = vmatprep.subr.bf16.mxu1 %v4298_v0  ;;  %v2793_v44 = vpack.c.bf16 %v1906_v40, %v1905_v39  ;;  %v1907_v40 = vld [vmem:[%s4335_s30] ss:$0 sm:$0xff] }
 0x151   :  { %2740 = vmatpush3.bf16.msra.mxu0 %v2739_v43  ;;  %v1890_v43 = vld [vmem:[%s4333_s22 + $0x378] sm:$0xff] }
 0x152   :  { %2741 = vmatprep.subr.bf16.mxu0 %v4298_v0  ;;  %v2769_v45 = vpack.c.bf16 %v1890_v43, %v1889_v42 }
 0x153   :  { %2716 = vmatpush3.bf16.msra.mxu1 %v2715_v46  ;;  %v822_v46 = vrot.slane %v3535_v55, 6 }
 0x154   :  { %2717 = vmatprep.subr.bf16.mxu1 %v4298_v0 }
 0x155   :  { %2743 = vmatpush3.bf16.msra.mxu0 %v2742_v49  ;;  %v943_v49 = vld [vmem:[%s4281_s8 + $0x8] sm:$0xff] }
 0x156   :  { %2744 = vmatprep.subr.bf16.mxu0 %v4298_v0  ;;  %v2796_v51 = vpack.c.bf16 %v943_v49, %v942_v48  ;;  %v1038_v48 = vld [vmem:[%s4283_s10 + $0x18] sm:$0xff] }
 0x157   :  { %2719 = vmatpush3.bf16.msra.mxu1 %v2718_v53  ;;  %v2799_v53 = vpack.c.bf16 %v945_v52, %v944_v50  ;;  %v1040_v52 = vld [vmem:[%s4283_s10 + $0x28] sm:$0xff] }
 0x158   :  { %2720 = vmatprep.subr.bf16.mxu1 %v4298_v0 }
 0x159   :  { %2746 = vmatpush3.bf16.msra.mxu0 %v2745_v14  ;;  %v2802_v14 = vpack.c.bf16 %v947_v13, %v946_v54  ;;  %v1041_v54 = vld [vmem:[%s4283_s10 + $0x30] sm:$0xff] }
 0x15a   :  { %2771 = vmatprep.subr.bf16.mxu0 %v4298_v0 }
 0x15b   :  { %2722 = vmatpush3.bf16.msra.mxu1 %v2721_v58  ;;  %v950_v58 = vld [vmem:[%s4281_s8 + $0x40] sm:$0xff] }
 0x15c   :  { %2394 = vmatmul.mubr.f32.vlgmr.msra.gmra.mrb[6].mxu0 %v642_v62  ;;  %2747 = vmatprep.subr.bf16.mxu1 %v4298_v0  ;;  %v2808_v60 = vpack.c.bf16 %v951_v59, %v950_v58  ;;  %v953_v62 = vld [vmem:[%s4281_s8 + $0x58] sm:$0xff] }
 0x15d   :  { %2773 = vmatpush3.bf16.msra.mxu0 %v2772_v61  ;;  %2463 = vmatprep.mubr.msk.f32.mxu0 %vm2992_vm0, %v2993_v12  ;;  %v952_v61 = vld [vmem:[%s4281_s8 + $0x50] sm:$0xff]  ;;  %v1046_v58 = vld [vmem:[%s4283_s10 + $0x58] sm:$0xff] }
 0x15e   :  { %2359 = vmatmul.mubr.f32.vlgmr.msra.gmra.mrb[4].mxu1 %v3535_v55  ;;  %2774 = vmatprep.subr.bf16.mxu0 %v4298_v0  ;;  %v948_v55 = vld [vmem:[%s4281_s8 + $0x30] sm:$0xff]  ;;  %v2811_v63 = vpack.c.bf16 %v953_v62, %v952_v61  ;;  %v1048_v61 = vld [vmem:[%s4283_s10 + $0x68] sm:$0xff] }
 0x15f   :  { %2749 = vmatpush3.bf16.msra.mxu1 %v2748_v2  ;;  %2428 = vmatprep.mubr.msk.f32.mxu1 %vm2992_vm0, %v2993_v12  ;;  %v2805_v57 = vpack.c.bf16 %v949_v56, %v948_v55  ;;  %v955_v2 = vld [vmem:[%s4281_s8 + $0x68] sm:$0xff] }
 0x160   :  { %2750 = vmatprep.subr.bf16.mxu1 %v4298_v0  ;;  %v2814_v4 = vpack.c.bf16 %v955_v2, %v954_v1  ;;  %v1044_v55 = vld [vmem:[%s4283_s10 + $0x48] sm:$0xff]  ;;  %v1050_v1 = vld [vmem:[%s4283_s10 + $0x78] sm:$0xff] }
 0x161   :  { %2776 = vmatpush3.bf16.msra.mxu0 %v2775_v5  ;;  %v956_v5 = vld [vmem:[%s4281_s8 + $0x70] sm:$0xff] }
 0x162   :  { %2777 = vmatprep.subr.bf16.mxu0 %v4298_v0  ;;  %v2817_v7 = vpack.c.bf16 %v957_v6, %v956_v5 }
 0x163   :  { %2752 = vmatpush3.bf16.msra.mxu1 %v2751_v8  ;;  %v4297_v8 = vlaneseq }
 0x164   :  { %2753 = vmatprep.subr.bf16.mxu1 %v4298_v0 }
 0x165   :  { %2779 = vmatpush3.bf16.msra.mxu0 %v2778_v11  ;;  %v3725_v9 = vshrl.u32 %v4297_v8, 7  ;;  %v1196_v8 = vld [vmem:[%s4284_s11 + $0x58] sm:$0xff] }
 0x166   :  { %2780 = vmatprep.subr.bf16.mxu0 %v4298_v0 }
 0x167   :  { %2755 = vmatpush3.bf16.msra.mxu1 %v2754_v17  ;;  %v1120_v10 = vsub.s32 1, %v3725_v9  ;;  %v3729_v11 = vsub.s32 0, %v3725_v9 }
 0x168   :  { %2756 = vmatprep.subr.bf16.mxu1 %v4298_v0 }
 0x169   :  { %2782 = vmatpush3.bf16.msra.mxu0 %v2781_v20  ;;  %v1121_v16 = vrot.slane %v3734_v15, %v1120_v10  ;;  %v1054_v17 = vrot.slane %v3734_v15, %v3729_v11 }
 0x16a   :  { %2783 = vmatprep.subr.bf16.mxu0 %v4298_v0 }
 0x16b   :  { %2758 = vmatpush3.bf16.msra.mxu1 %v2757_v23  ;;  %1123 = vbcast.lane.b32.xlu1 %v1121_v16, 256 }
 0x16c   :  { %2759 = vmatprep.subr.bf16.mxu1 %v4298_v0  ;;  %1056 = vbcast.lane.b32.xlu0 %v1054_v17, 256 }
 0x16d   :  { %2785 = vmatpush3.bf16.msra.mxu0 %v2784_v26 }
 0x16e   :  { %2786 = vmatprep.subr.bf16.mxu0 %v4298_v0 }
 0x16f   :  { %2761 = vmatpush3.bf16.msra.mxu1 %v2760_v29  ;;  %1127 = vbcast.lane.b32.xlu1 %v1121_v16, 264 }
 0x170   :  { %2762 = vmatprep.subr.bf16.mxu1 %v4298_v0  ;;  %1060 = vbcast.lane.b32.xlu0 %v1054_v17, 264 }
 0x171   :  { %2788 = vmatpush3.bf16.msra.mxu0 %v2787_v32 }
 0x172   :  { %2789 = vmatprep.subr.bf16.mxu0 %v4298_v0 }
 0x173   :  { %2764 = vmatpush3.bf16.msra.mxu1 %v2763_v35  ;;  %1131 = vbcast.lane.b32.xlu1 %v1121_v16, 272 }
 0x174   :  { %2765 = vmatprep.subr.bf16.mxu1 %v4298_v0  ;;  %1064 = vbcast.lane.b32.xlu0 %v1054_v17, 272 }
 0x175   :  { %2791 = vmatpush3.bf16.msra.mxu0 %v2790_v38 }
 0x176   :  { %2792 = vmatprep.subr.bf16.mxu0 %v4298_v0 }
 0x177   :  { %2767 = vmatpush3.bf16.msra.mxu1 %v2766_v41  ;;  %1135 = vbcast.lane.b32.xlu1 %v1121_v16, 280 }
 0x178   :  { %2768 = vmatprep.subr.bf16.mxu1 %v4298_v0  ;;  %1068 = vbcast.lane.b32.xlu0 %v1054_v17, 280 }
 0x179   :  { %2794 = vmatpush3.bf16.msra.mxu0 %v2793_v44  ;;  %v1035_v44 = vld [vmem:[%s4283_s10] sm:$0xff] }
 0x17a   :  { %2843 = vmatprep.subr.bf16.mxu0 %v4298_v0 }
 0x17b   :  { %2770 = vmatpush3.bf16.msra.mxu1 %v2769_v45  ;;  %1139 = vbcast.lane.b32.xlu1 %v1121_v16, 288  ;;  %v1036_v45 = vld [vmem:[%s4283_s10 + $0x8] sm:$0xff] }
 0x17c   :  { %2464 = vmatmul.mubr.f32.vlgmr.msra.gmra.mrb[8].mxu0 %v822_v46  ;;  %2795 = vmatprep.subr.bf16.mxu1 %v4298_v0  ;;  %v2820_v46 = vpack.c.bf16 %v1036_v45, %v1035_v44  ;;  %v3864_v44 = vld [vmem:[#allocation3 + $0x18] sm:$0xff] }
 0x17d   :  { %2568 = vmatprep.mubr.msk.f32.mxu0 %vm2992_vm0, %v2993_v12  ;;  %1072 = vbcast.lane.b32.xlu0 %v1054_v17, 288 }
 0x17e   :  { %2429 = vmatmul.mubr.f32.vlgmr.msra.gmra.mrb[6].mxu1 %v732_v47  ;;  %v1037_v47 = vld [vmem:[%s4283_s10 + $0x10] sm:$0xff] }
 0x17f   :  { %2498 = vmatprep.mubr.msk.f32.mxu1 %vm2992_vm0, %v2993_v12  ;;  %2797 = vmatpush3.bf16.msra.mxu1 %v2796_v51  ;;  %v2823_v50 = vpack.c.bf16 %v1038_v48, %v1037_v47  ;;  %v1039_v51 = vld [vmem:[%s4283_s10 + $0x20] sm:$0xff] }
 0x180   :  { %2798 = vmatprep.subr.bf16.mxu1 %v4298_v0  ;;  %1143 = vbcast.lane.b32.xlu1 %v1121_v16, 296 }
 0x181   :  { %1076 = vbcast.lane.b32.xlu0 %v1054_v17, 296 }
 0x183   :  { %2800 = vmatpush3.bf16.msra.mxu1 %v2799_v53  ;;  %v2826_v53 = vpack.c.bf16 %v1040_v52, %v1039_v51  ;;  %v3870_v51 = vld [vmem:[#allocation3 + $0xa0] sm:$0xff] }
 0x184   :  { %2801 = vmatprep.subr.bf16.mxu1 %v4298_v0  ;;  %1147 = vbcast.lane.b32.xlu1 %v1121_v16, 304  ;;  %4340 = vst [vmem:[#allocation17_spill] sm:$0xff] %v3870_v51  ;;  %v1189_v52 = vld [vmem:[%s4284_s11 + $0x20] sm:$0xff] }
 0x185   :  { %1080 = vbcast.lane.b32.xlu0 %v1054_v17, 304 }
 0x187   :  { %2803 = vmatpush3.bf16.msra.mxu1 %v2802_v14  ;;  %v1043_v14 = vld [vmem:[%s4283_s10 + $0x40] sm:$0xff] }
 0x188   :  { %2804 = vmatprep.subr.bf16.mxu1 %v4298_v0  ;;  %1151 = vbcast.lane.b32.xlu1 %v1121_v16, 312  ;;  %v2832_v56 = vpack.c.bf16 %v1044_v55, %v1043_v14 }
 0x189   :  { %1084 = vbcast.lane.b32.xlu0 %v1054_v17, 312 }
 0x18b   :  { %2806 = vmatpush3.bf16.msra.mxu1 %v2805_v57  ;;  %v1045_v57 = vld [vmem:[%s4283_s10 + $0x50] sm:$0xff] }
 0x18c   :  { %2807 = vmatprep.subr.bf16.mxu1 %v4298_v0  ;;  %1155 = vbcast.lane.b32.xlu1 %v1121_v16, 320  ;;  %v2835_v59 = vpack.c.bf16 %v1046_v58, %v1045_v57 }
 0x18d   :  { %1088 = vbcast.lane.b32.xlu0 %v1054_v17, 320 }
 0x18f   :  { %2809 = vmatpush3.bf16.msra.mxu1 %v2808_v60  ;;  %v1047_v60 = vld [vmem:[%s4283_s10 + $0x60] sm:$0xff] }
 0x190   :  { %2810 = vmatprep.subr.bf16.mxu1 %v4298_v0  ;;  %1159 = vbcast.lane.b32.xlu1 %v1121_v16, 328  ;;  %v2838_v62 = vpack.c.bf16 %v1048_v61, %v1047_v60  ;;  %v1190_v60 = vld [vmem:[%s4284_s11 + $0x28] sm:$0xff] }
 0x191   :  { %1092 = vbcast.lane.b32.xlu0 %v1054_v17, 328  ;;  %v3890_v61 = vld [vmem:[#allocation3 + $0x28] sm:$0xff] }
 0x193   :  { %2812 = vmatpush3.bf16.msra.mxu1 %v2811_v63  ;;  %v1049_v63 = vld [vmem:[%s4283_s10 + $0x70] sm:$0xff] }
 0x194   :  { %2813 = vmatprep.subr.bf16.mxu1 %v4298_v0  ;;  %1163 = vbcast.lane.b32.xlu1 %v1121_v16, 336  ;;  %v2841_v2 = vpack.c.bf16 %v1050_v1, %v1049_v63  ;;  %v1206_v63 = vmul.f32 %v1190_v60, %v3890_v61 }
 0x195   :  { %1096 = vbcast.lane.b32.xlu0 %v1054_v17, 336 }
 0x197   :  { %2815 = vmatpush3.bf16.msra.mxu1 %v2814_v4 }
 0x198   :  { %2816 = vmatprep.subr.bf16.mxu1 %v4298_v0  ;;  %1167 = vbcast.lane.b32.xlu1 %v1121_v16, 344 }
 0x199   :  { %1100 = vbcast.lane.b32.xlu0 %v1054_v17, 344 }
 0x19b   :  { %2818 = vmatpush3.bf16.msra.mxu1 %v2817_v7 }
 0x19c   :  { %2819 = vmatprep.subr.bf16.mxu1 %v4298_v0  ;;  %1171 = vbcast.lane.b32.xlu1 %v1121_v16, 352 }
 0x19d   :  { %1104 = vbcast.lane.b32.xlu0 %v1054_v17, 352 }
 0x1a0   :  { %1175 = vbcast.lane.b32.xlu1 %v1121_v16, 360 }
 0x1a1   :  { %1108 = vbcast.lane.b32.xlu0 %v1054_v17, 360 }
 0x1a4   :  { %1179 = vbcast.lane.b32.xlu1 %v1121_v16, 368 }
 0x1a5   :  { %1112 = vbcast.lane.b32.xlu0 %v1054_v17, 368 }
 0x1a8   :  { %1183 = vbcast.lane.b32.xlu1 %v1121_v16, 376 }
 0x1a9   :  { %1116 = vbcast.lane.b32.xlu0 %v1054_v17, 376 }
 0x1dd   :  { %v3800_v3 = vpop.permute.xlu1 %1123 }
 0x1de   :  { %v3802_v4 = vpop.permute.xlu0 %1056 }
 0x1e1   :  { %v3804_v5 = vpop.permute.xlu1 %1127 }
 0x1e2   :  { %v3806_v6 = vpop.permute.xlu0 %1060 }
 0x1e5   :  { %v3808_v7 = vpop.permute.xlu1 %1131 }
 0x1e6   :  { %v3810_v10 = vpop.permute.xlu0 %1064 }
 0x1e9   :  { %v3812_v16 = vpop.permute.xlu1 %1135 }
 0x1ea   :  { %v3814_v17 = vpop.permute.xlu0 %1068 }
 0x1ef   :  { %v352_v18 = vpop.f32.mrb[2].mxu0 }
 0x1f0   :  { %v2255_v19 = vpop.f32.mrb[3].mxu0 }
 0x1f1   :  { %v282_v20 = vpop.f32.mrb[0].mxu1  ;;  %v3818_v19 = vpop.permute.xlu0 %1072 }
 0x1f2   :  { %v353_v21 = vadd.f32 %v352_v18, %v282_v20  ;;  %v2220_v22 = vpop.f32.mrb[1].mxu1  ;;  %v3816_v18 = vpop.permute.xlu1 %1139  ;;  %v1185_v20 = vld [vmem:[%s4284_s11] sm:$0xff] }
 0x1f3   :  { %v3827_v22 = vld [vmem:[#allocation3 + $0x88] sm:$0xff] }
 0x1f4   :  { %4337 = vst [vmem:[#allocation14_spill] sm:$0xff] %v3827_v22 }
 0x20f   :  { %v531_v23 = vpop.f32.mrb[4].mxu0 }
 0x210   :  { %v2325_v24 = vpop.f32.mrb[5].mxu0 }
 0x211   :  { %v441_v25 = vpop.f32.mrb[2].mxu1  ;;  %v3832_v24 = vld [vmem:[#allocation3 + $0x8] sm:$0xff] }
 0x212   :  { %v445_v26 = vadd.f32 %v441_v25, %v353_v21  ;;  %v2290_v27 = vpop.f32.mrb[3].mxu1  ;;  %v3825_v21 = vld [vmem:[#allocation3] sm:$0xff]  ;;  %v3834_v25 = vpop.permute.xlu1 %1143 }
 0x214   :  { %v535_v28 = vadd.f32 %v531_v23, %v445_v26  ;;  %v1186_v23 = vld [vmem:[%s4284_s11 + $0x8] sm:$0xff]  ;;  %v3836_v26 = vpop.permute.xlu0 %1076 }
 0x22f   :  { %v710_v29 = vpop.f32.mrb[6].mxu0 }
 0x230   :  { %v2395_v30 = vpop.f32.mrb[7].mxu0 }
 0x231   :  { %v619_v31 = vpop.f32.mrb[4].mxu1  ;;  %v1202_v30 = vmul.f32 %v1186_v23, %v3832_v24 }
 0x232   :  { %v623_v32 = vadd.f32 %v619_v31, %v535_v28  ;;  %v2360_v33 = vpop.f32.mrb[5].mxu1  ;;  %v1201_v28 = vmul.f32 %v1185_v20, %v3825_v21  ;;  %v3842_v31 = vld [vmem:[#allocation3 + $0x90] sm:$0xff] }
 0x233   :  { %4338 = vst [vmem:[#allocation15_spill] sm:$0xff] %v3842_v31  ;;  %v3847_v33 = vld [vmem:[#allocation3 + $0x10] sm:$0xff] }
 0x234   :  { %v714_v34 = vadd.f32 %v710_v29, %v623_v32  ;;  %v1218_v29 = vmul.f32 %v1186_v23, %v3827_v22  ;;  %v1187_v32 = vld [vmem:[%s4284_s11 + $0x10] sm:$0xff] }
 0x24f   :  { %v890_v35 = vpop.f32.mrb[8].mxu0 }
 0x250   :  { %v2465_v36 = vpop.f32.mrb[9].mxu0 }
 0x251   :  { %v800_v37 = vpop.f32.mrb[6].mxu1  ;;  %v3851_v36 = vpop.permute.xlu1 %1147 }
 0x252   :  { %v804_v38 = vadd.f32 %v800_v37, %v714_v34  ;;  %v2430_v39 = vpop.f32.mrb[7].mxu1  ;;  %v1219_v34 = vmul.f32 %v1187_v32, %v3842_v31  ;;  %v3853_v37 = vpop.permute.xlu0 %1080 }
 0x253   :  { %v1233_v39 = vmul.f32 %v1201_v28, %v3802_v4 }
 0x254   :  { %v894_v41 = vadd.f32 %v890_v35, %v804_v38  ;;  %v1203_v35 = vmul.f32 %v1187_v32, %v3847_v33  ;;  %v3905_v32 = vld [vmem:[#allocation3 + $0x30] sm:$0xff] }
 0x255   :  { %4343 = vst [vmem:[#allocation20_spill] sm:$0xff] %v3905_v32 }
 0x256   :  { %v902_v42 = vadd.f32 %v1907_v40, %v894_v41  ;;  %v1250_v40 = vmul.f32 %v1218_v29, %v3804_v5  ;;  %v1234_v41 = vmul.f32 %v1202_v30, %v3806_v6  ;;  %v3900_v29 = vld [vmem:[#allocation3 + $0xb0] sm:$0xff] }
 0x257   :  { %4342 = vst [vmem:[#allocation19_spill] sm:$0xff] %v3900_v29  ;;  %v1191_v30 = vld [vmem:[%s4284_s11 + $0x30] sm:$0xff] }
 0x258   :  { %v903_v43 = vmax.f32 %v902_v42, 0.0  ;;  %v3859_v42 = vld [vmem:[#allocation3 + $0x98] sm:$0xff]  ;;  %v1265_v48 = vadd.f32 %v1234_v41, %v1233_v39  ;;  %v1238_v41 = vmul.f32 %v1206_v63, %v3836_v26 }
 0x259   :  { %4339 = vst [vmem:[#allocation16_spill] sm:$0xff] %v3859_v42 }
 0x25a   :  { %940 = vst.msk [vmem:[#allocation2] sm:$0x3] %vm939_vm1, %v903_v43  ;;  %v1188_v43 = vld [vmem:[%s4284_s11 + $0x18] sm:$0xff] }
 0x25b   :  { %v1220_v45 = vmul.f32 %v1188_v43, %v3859_v42  ;;  %v4013_v42 = vld [vmem:[#allocation3 + $0x70] sm:$0xff] }
 0x25c   :  { %4359 = vst [vmem:[#allocation36_spill] sm:$0xff] %v4013_v42 }
 0x25d   :  { %v1252_v57 = vmul.f32 %v1220_v45, %v3812_v16  ;;  %v1192_v45 = vld [vmem:[%s4284_s11 + $0x38] sm:$0xff] }
 0x261   :  { %v941_v49 = vld [vmem:[#allocation2] sm:$0x3] }
 0x262   :  { %2499 = vmatmul.mubr.f32.vlgmr.msra.gmra.mrb[8].mxu1 %v941_v49  ;;  %v1251_v49 = vmul.f32 %v1219_v34, %v3808_v7  ;;  %v1223_v34 = vmul.f32 %v1191_v30, %v3900_v29 }
 0x263   :  { %2821 = vmatpush3.bf16.msra.mxu1 %v2820_v46  ;;  %2533 = vmatprep.mubr.msk.f32.mxu1 %vm2992_vm0, %v2993_v12  ;;  %v1042_v12 = vld [vmem:[%s4283_s10 + $0x38] sm:$0xff]  ;;  %v1204_v46 = vmul.f32 %v1188_v43, %v3864_v44 }
 0x264   :  { %2822 = vmatprep.subr.bf16.mxu1 %v4298_v0  ;;  %v2829_v13 = vpack.c.bf16 %v1042_v12, %v1041_v54  ;;  %v3877_v54 = vpop.permute.xlu1 %1151  ;;  %v3879_v12 = vpop.permute.xlu0 %1084  ;;  %v3911_v43 = vld [vmem:[#allocation3 + $0xb8] sm:$0xff] }
 0x265   :  { %v1236_v58 = vmul.f32 %v1204_v46, %v3814_v17  ;;  %4344 = vst [vmem:[#allocation21_spill] sm:$0xff] %v3911_v43  ;;  %v3916_v46 = vld [vmem:[#allocation3 + $0x38] sm:$0xff] }
 0x266   :  { %4345 = vst [vmem:[#allocation22_spill] sm:$0xff] %v3916_v46 }
 0x267   :  { %2824 = vmatpush3.bf16.msra.mxu1 %v2823_v50  ;;  %v1235_v50 = vmul.f32 %v1203_v35, %v3810_v10  ;;  %v1207_v35 = vmul.f32 %v1191_v30, %v3905_v32 }
 0x268   :  { %2825 = vmatprep.subr.bf16.mxu1 %v4298_v0  ;;  %v3894_v1 = vpop.permute.xlu1 %1155 }
 0x26b   :  { %2827 = vmatpush3.bf16.msra.mxu1 %v2826_v53  ;;  %v3875_v53 = vld [vmem:[#allocation3 + $0x20] sm:$0xff] }
 0x26c   :  { %2828 = vmatprep.subr.bf16.mxu1 %v4298_v0  ;;  %v1205_v14 = vmul.f32 %v1189_v52, %v3875_v53 }
 0x26e   :  { %v1237_v28 = vmul.f32 %v1205_v14, %v3818_v19  ;;  %v1255_v14 = vmul.f32 %v1223_v34, %v3851_v36  ;;  %v3941_v34 = vld [vmem:[#allocation3 + $0xc8] sm:$0xff] }
 0x26f   :  { %2830 = vmatpush3.bf16.msra.mxu1 %v2829_v13  ;;  %v1221_v13 = vmul.f32 %v1189_v52, %v3870_v51  ;;  %4348 = vst [vmem:[#allocation25_spill] sm:$0xff] %v3941_v34 }
 0x270   :  { %2831 = vmatprep.subr.bf16.mxu1 %v4298_v0 }
 0x273   :  { %2833 = vmatpush3.bf16.msra.mxu1 %v2832_v56  ;;  %v1266_v56 = vadd.f32 %v1265_v48, %v1235_v50  ;;  %v1208_v50 = vmul.f32 %v1192_v45, %v3916_v46 }
 0x274   :  { %2834 = vmatprep.subr.bf16.mxu1 %v4298_v0 }
 0x275   :  { %v1267_v23 = vadd.f32 %v1266_v56, %v1236_v58  ;;  %v3926_v56 = vld [vmem:[#allocation3 + $0xc0] sm:$0xff]  ;;  %v1240_v30 = vmul.f32 %v1208_v50, %v3879_v12  ;;  %v1195_v50 = vld [vmem:[%s4284_s11 + $0x50] sm:$0xff] }
 0x276   :  { %4346 = vst [vmem:[#allocation23_spill] sm:$0xff] %v3926_v56  ;;  %v3931_v58 = vld [vmem:[#allocation3 + $0x40] sm:$0xff] }
 0x277   :  { %2836 = vmatpush3.bf16.msra.mxu1 %v2835_v59  ;;  %v3885_v59 = vld [vmem:[#allocation3 + $0xa8] sm:$0xff]  ;;  %v1268_v39 = vadd.f32 %v1267_v23, %v1237_v28  ;;  %4347 = vst [vmem:[#allocation24_spill] sm:$0xff] %v3931_v58 }
 0x278   :  { %2837 = vmatprep.subr.bf16.mxu1 %v4298_v0  ;;  %4341 = vst [vmem:[#allocation18_spill] sm:$0xff] %v3885_v59 }
 0x27b   :  { %2839 = vmatpush3.bf16.msra.mxu1 %v2838_v62  ;;  %v1222_v62 = vmul.f32 %v1190_v60, %v3885_v59 }
 0x27c   :  { %2840 = vmatprep.subr.bf16.mxu1 %v4298_v0  ;;  %v3972_v0 = vld [vmem:[#allocation3 + $0x58] sm:$0xff] }
 0x27d   :  { %4353 = vst [vmem:[#allocation30_spill] sm:$0xff] %v3972_v0 }
 0x27f   :  { %2842 = vmatpush3.bf16.msra.mxu1 %v2841_v2  ;;  %v3896_v2 = vpop.permute.xlu0 %1088 }
 0x282   :  { %2534 = vmatmul.mubr.f32.vlgmr.msra.gmra.mrb[8].mxu1 %v3734_v15  ;;  %v3820_v15 = vld [vmem:[#allocation3 + $0x80] sm:$0xff] }
 0x283   :  { %4336 = vst [vmem:[#allocation13_spill] sm:$0xff] %v3820_v15  ;;  %v1217_v27 = vmul.f32 %v1185_v20, %v3820_v15  ;;  %v3920_v48 = vpop.permute.xlu0 %1092  ;;  %v4028_v15 = vld [vmem:[#allocation3 + $0x78] sm:$0xff] }
 0x284   :  { %4361 = vst [vmem:[#allocation38_spill] sm:$0xff] %v4028_v15 }
 0x285   :  { %v1249_v38 = vmul.f32 %v1217_v27, %v3800_v3  ;;  %v1253_v27 = vmul.f32 %v1221_v13, %v3816_v18  ;;  %v1269_v13 = vadd.f32 %v1268_v39, %v1238_v41 }
 0x287   :  { %v1286_v47 = vadd.f32 %v1250_v40, %v1249_v38  ;;  %v1254_v40 = vmul.f32 %v1222_v62, %v3834_v25 }
 0x289   :  { %v1287_v55 = vadd.f32 %v1286_v47, %v1251_v49  ;;  %v3918_v47 = vpop.permute.xlu1 %1159  ;;  %v1224_v49 = vmul.f32 %v1192_v45, %v3911_v43  ;;  %v3987_v43 = vld [vmem:[#allocation3 + $0x60] sm:$0xff] }
 0x28a   :  { %4355 = vst [vmem:[#allocation32_spill] sm:$0xff] %v3987_v43 }
 0x28b   :  { %v1288_v20 = vadd.f32 %v1287_v55, %v1252_v57  ;;  %v1239_v55 = vmul.f32 %v1207_v35, %v3853_v37  ;;  %v1193_v57 = vld [vmem:[%s4284_s11 + $0x40] sm:$0xff]  ;;  %v1256_v28 = vmul.f32 %v1224_v49, %v3877_v54  ;;  %v1194_v35 = vld [vmem:[%s4284_s11 + $0x48] sm:$0xff] }
 0x28c   :  { %v1225_v60 = vmul.f32 %v1193_v57, %v3926_v56  ;;  %v1209_v62 = vmul.f32 %v1193_v57, %v3931_v58  ;;  %v1226_v39 = vmul.f32 %v1194_v35, %v3941_v34 }
 0x28d   :  { %v1289_v38 = vadd.f32 %v1288_v20, %v1253_v27  ;;  %v3935_v63 = vpop.permute.xlu1 %1163  ;;  %v3937_v20 = vpop.permute.xlu0 %1096  ;;  %v1270_v27 = vadd.f32 %v1269_v13, %v1239_v55  ;;  %v3952_v13 = vld [vmem:[#allocation3 + $0xd0] sm:$0xff] }
 0x28e   :  { %v1241_v49 = vmul.f32 %v1209_v62, %v3896_v2  ;;  %4350 = vst [vmem:[#allocation27_spill] sm:$0xff] %v3952_v13  ;;  %v1258_v62 = vmul.f32 %v1226_v39, %v3918_v47 }
 0x28f   :  { %v1290_v52 = vadd.f32 %v1289_v38, %v1254_v40  ;;  %v3946_v38 = vld [vmem:[#allocation3 + $0x48] sm:$0xff]  ;;  %v1271_v45 = vadd.f32 %v1270_v27, %v1240_v30  ;;  %v3967_v30 = vld [vmem:[#allocation3 + $0xd8] sm:$0xff] }
 0x290   :  { %4349 = vst [vmem:[#allocation26_spill] sm:$0xff] %v3946_v38  ;;  %v1210_v40 = vmul.f32 %v1194_v35, %v3946_v38  ;;  %v1227_v35 = vmul.f32 %v1195_v50, %v3952_v13  ;;  %4352 = vst [vmem:[#allocation29_spill] sm:$0xff] %v3967_v30  ;;  %v1228_v34 = vmul.f32 %v1196_v8, %v3967_v30 }
 0x291   :  { %v1291_v23 = vadd.f32 %v1290_v52, %v1255_v14  ;;  %v1257_v52 = vmul.f32 %v1225_v60, %v3894_v1  ;;  %v3957_v14 = vld [vmem:[#allocation3 + $0x50] sm:$0xff]  ;;  %v3959_v55 = vpop.permute.xlu1 %1167  ;;  %v3961_v57 = vpop.permute.xlu0 %1100  ;;  %v1272_v60 = vadd.f32 %v1271_v45, %v1241_v49  ;;  %v1212_v13 = vmul.f32 %v1196_v8, %v3972_v0  ;;  %v3982_v49 = vld [vmem:[#allocation3 + $0xe0] sm:$0xff] }
 0x292   :  { %4351 = vst [vmem:[#allocation28_spill] sm:$0xff] %v3957_v14  ;;  %4354 = vst [vmem:[#allocation31_spill] sm:$0xff] %v3982_v49 }
 0x293   :  { %v1292_v41 = vadd.f32 %v1291_v23, %v1256_v28  ;;  %v1211_v23 = vmul.f32 %v1195_v50, %v3957_v14  ;;  %v1242_v28 = vmul.f32 %v1210_v40, %v3920_v48  ;;  %v1259_v40 = vmul.f32 %v1227_v35, %v3935_v63  ;;  %v1197_v50 = vld [vmem:[%s4284_s11 + $0x60] sm:$0xff] }
 0x294   :  { %v1229_v8 = vmul.f32 %v1197_v50, %v3982_v49  ;;  %v1213_v30 = vmul.f32 %v1197_v50, %v3987_v43  ;;  %v1244_v35 = vmul.f32 %v1212_v13, %v3961_v57  ;;  %v1199_v49 = vld [vmem:[%s4284_s11 + $0x70] sm:$0xff] }
 0x295   :  { %v1293_v27 = vadd.f32 %v1292_v41, %v1257_v52  ;;  %v3976_v56 = vpop.permute.xlu1 %1171  ;;  %v3978_v41 = vpop.permute.xlu0 %1104  ;;  %v1273_v39 = vadd.f32 %v1272_v60, %v1242_v28  ;;  %v1243_v52 = vmul.f32 %v1211_v23, %v3937_v20  ;;  %v3993_v60 = vld [vmem:[#allocation3 + $0xe8] sm:$0xff] }
 0x296   :  { %4356 = vst [vmem:[#allocation33_spill] sm:$0xff] %v3993_v60  ;;  %v1198_v23 = vld [vmem:[%s4284_s11 + $0x68] sm:$0xff]  ;;  %v1261_v13 = vmul.f32 %v1229_v8, %v3976_v56 }
 0x297   :  { %v1294_v45 = vadd.f32 %v1293_v27, %v1258_v62  ;;  %v1274_v59 = vadd.f32 %v1273_v39, %v1243_v52  ;;  %v1260_v27 = vmul.f32 %v1228_v34, %v3959_v55  ;;  %v3998_v62 = vld [vmem:[#allocation3 + $0x68] sm:$0xff]  ;;  %v1230_v50 = vmul.f32 %v1198_v23, %v3993_v60  ;;  %v4008_v52 = vld [vmem:[#allocation3 + $0xf0] sm:$0xff] }
 0x298   :  { %4357 = vst [vmem:[#allocation34_spill] sm:$0xff] %v3998_v62  ;;  %4358 = vst [vmem:[#allocation35_spill] sm:$0xff] %v4008_v52  ;;  %v1231_v31 = vmul.f32 %v1199_v49, %v4008_v52  ;;  %v1200_v60 = vld [vmem:[%s4284_s11 + $0x78] sm:$0xff] }
 0x299   :  { %v1295_v29 = vadd.f32 %v1294_v45, %v1259_v40  ;;  %v4000_v28 = vpop.permute.xlu1 %1175  ;;  %v4002_v51 = vpop.permute.xlu0 %1108  ;;  %v1214_v45 = vmul.f32 %v1198_v23, %v3998_v62  ;;  %v1275_v34 = vadd.f32 %v1274_v59, %v1244_v35  ;;  %v1245_v40 = vmul.f32 %v1213_v30, %v3978_v41  ;;  %v4023_v35 = vld [vmem:[#allocation3 + $0xf8] sm:$0xff] }
 0x29a   :  { %v1215_v23 = vmul.f32 %v1199_v49, %v4013_v42  ;;  %v1262_v30 = vmul.f32 %v1230_v50, %v4000_v28  ;;  %4360 = vst [vmem:[#allocation37_spill] sm:$0xff] %v4023_v35  ;;  %v1232_v52 = vmul.f32 %v1200_v60, %v4023_v35  ;;  %v1216_v49 = vmul.f32 %v1200_v60, %v4028_v15 }
 0x29b   :  { %v1296_v39 = vadd.f32 %v1295_v29, %v1260_v27  ;;  %v1276_v8 = vadd.f32 %v1275_v34, %v1245_v40  ;;  %v1246_v27 = vmul.f32 %v1214_v45, %v4002_v51 }
 0x29d   :  { %v4016_v22 = vpop.permute.xlu1 %1179  ;;  %v4019_v29 = vpop.permute.xlu0 %1112  ;;  %v1297_v59 = vadd.f32 %v1296_v39, %v1261_v13  ;;  %v1277_v62 = vadd.f32 %v1276_v8, %v1246_v27 }
 0x29e   :  { %v1263_v39 = vmul.f32 %v1231_v31, %v4016_v22  ;;  %v1247_v50 = vmul.f32 %v1215_v23, %v4019_v29 }
 0x29f   :  { %v1298_v42 = vadd.f32 %v1297_v59, %v1262_v30 }
 0x2a0   :  { %v1278_v40 = vadd.f32 %v1277_v62, %v1247_v50  ;;  %v1421_v50 = vld [vmem:[%s4287_s14 + $0x18] sm:$0xff] }
 0x2a1   :  { %v4034_v34 = vpop.permute.xlu1 %1183  ;;  %v4036_v45 = vpop.permute.xlu0 %1116  ;;  %v1299_v13 = vadd.f32 %v1298_v42, %v1263_v39  ;;  %v1908_v42 = vld [vmem:[%s4282_s9] ss:$0 sm:$0xff]  ;;  %v1420_v39 = vld [vmem:[%s4287_s14 + $0x10] sm:$0xff] }
 0x2a2   :  { %v1264_v43 = vmul.f32 %v1232_v52, %v4034_v34  ;;  %v1248_v0 = vmul.f32 %v1216_v49, %v4036_v45 }
 0x2a4   :  { %v1300_v14 = vadd.f32 %v1299_v13, %v1264_v43  ;;  %v1279_v35 = vadd.f32 %v1278_v40, %v1248_v0  ;;  %v2847_v13 = vpack.c.bf16 %v1421_v50, %v1420_v39  ;;  %v1422_v40 = vld [vmem:[%s4287_s14 + $0x20] sm:$0xff] }
 0x2a6   :  { %v1301_v38 = vrot.slane %v1300_v14, 4  ;;  %v1280_v60 = vrot.slane %v1279_v35, 4 }
 0x2a8   :  { %v1302_v59 = vadd.f32 %v1301_v38, %v1300_v14  ;;  %v1281_v8 = vadd.f32 %v1280_v60, %v1279_v35  ;;  %v1423_v60 = vld [vmem:[%s4287_s14 + $0x28] sm:$0xff] }
 0x2aa   :  { %v1303_v30 = vrot.slane %v1302_v59, 2  ;;  %v1282_v31 = vrot.slane %v1281_v8, 2 }
 0x2ac   :  { %v1304_v27 = vadd.f32 %v1303_v30, %v1302_v59  ;;  %v1283_v23 = vadd.f32 %v1282_v31, %v1281_v8  ;;  %v2850_v59 = vpack.c.bf16 %v1423_v60, %v1422_v40  ;;  %v1424_v8 = vld [vmem:[%s4287_s14 + $0x30] sm:$0xff]  ;;  %v1425_v30 = vld [vmem:[%s4287_s14 + $0x38] sm:$0xff] }
 0x2ad   :  { %v2853_v31 = vpack.c.bf16 %v1425_v30, %v1424_v8 }
 0x2ae   :  { %v1305_v15 = vrot.slane %v1304_v27, 1  ;;  %v1284_v58 = vrot.slane %v1283_v23, 1 }
 0x2b0   :  { %v1285_v46 = vadd.f32 %v1284_v58, %v1283_v23  ;;  %v1306_v32 = vadd.f32 %v1305_v15, %v1304_v27  ;;  %v1418_v15 = vld [vmem:[%s4287_s14] sm:$0xff]  ;;  %v4362_v58 = vmov 0.0|0.0   ;;  %v1427_v23 = vld [vmem:[%s4287_s14 + $0x48] sm:$0xff] }
 0x2b1   :  { %v1426_v27 = vld [vmem:[%s4287_s14 + $0x40] sm:$0xff] }
 0x2b2   :  { %v1310_v62 = vsel %vm1309_vm2, %v1306_v32, %v1285_v46  ;;  %v1419_v32 = vld [vmem:[%s4287_s14 + $0x8] sm:$0xff] }
 0x2b3   :  { %v2867_v43 = vadd.f32 %v1908_v42, %v1310_v62  ;;  %v2844_v46 = vpack.c.bf16 %v1419_v32, %v1418_v15  ;;  %v2856_v42 = vpack.c.bf16 %v1427_v23, %v1426_v27  ;;  %v1428_v62 = vld [vmem:[%s4287_s14 + $0x50] sm:$0xff]  ;;  %v1433_v15 = vld [vmem:[%s4287_s14 + $0x78] sm:$0xff]  ;;  %v1910_v23 = vld [vmem:[%s4286_s13] ss:$0 sm:$0xff] }
 0x2b5   :  { %2845 = vmatpush3.bf16.msra.mxu0 %v2844_v46 }
 0x2b6   :  { %2846 = vmatprep.subr.bf16.mxu0 %v4362_v58 }
 0x2b9   :  { %2848 = vmatpush3.bf16.msra.mxu0 %v2847_v13 }
 0x2ba   :  { %2849 = vmatprep.subr.bf16.mxu0 %v4362_v58 }
 0x2bd   :  { %2851 = vmatpush3.bf16.msra.mxu0 %v2850_v59 }
 0x2be   :  { %2852 = vmatprep.subr.bf16.mxu0 %v4362_v58 }
 0x2c1   :  { %2854 = vmatpush3.bf16.msra.mxu0 %v2853_v31  ;;  %v1909_v31 = vld [vmem:[%s4285_s12] ss:$0 sm:$0xff] }
 0x2c2   :  { %2855 = vmatprep.subr.bf16.mxu0 %v4362_v58 }
 0x2c5   :  { %2857 = vmatpush3.bf16.msra.mxu0 %v2856_v42 }
 0x2c6   :  { %2858 = vmatprep.subr.bf16.mxu0 %v4362_v58 }
 0x355   :  { %v1378_v0 = vpop.f32.mrb[8].mxu1 }
 0x356   :  { %v2868_v52 = vadd.f32 %v2867_v43, %v1378_v0  ;;  %v2535_v38 = vpop.f32.mrb[9].mxu1  ;;  %v1429_v43 = vld [vmem:[%s4287_s14 + $0x58] sm:$0xff] }
 0x357   :  { %v2859_v0 = vpack.c.bf16 %v1429_v43, %v1428_v62  ;;  %v1430_v38 = vld [vmem:[%s4287_s14 + $0x60] sm:$0xff] }
 0x358   :  { %v1384_v14 = vsel %vm1383_vm3, %v2868_v52, 0.0  ;;  %v1389_v35 = vmul.f32 %v2868_v52, %v2868_v52 }
 0x359   :  { %1385 = vadd.xlane.f32.xlu0 %v1384_v14  ;;  %2860 = vmatpush3.bf16.msra.mxu0 %v2859_v0  ;;  %v1431_v14 = vld [vmem:[%s4287_s14 + $0x68] sm:$0xff]  ;;  %v2994_v0 = vmov 5  }
 0x35a   :  { %v1390_v49 = vsel %vm1383_vm3, %v1389_v35, 0.0  ;;  %2861 = vmatprep.subr.bf16.mxu0 %v4362_v58  ;;  %v2862_v35 = vpack.c.bf16 %v1431_v14, %v1430_v38  ;;  %2882 = vset.pattern.permute.xlu1 %v2994_v0  ;;  %v1911_v14 = vld [vmem:[%s4288_s15] ss:$0 sm:$0xff] }
 0x35b   :  { %1391 = vadd.xlane.f32.xlu1 %v1390_v49  ;;  %v1432_v49 = vld [vmem:[%s4287_s14 + $0x70] sm:$0xff]  ;;  %2883 = vset.pattern.permute.xlu0 %v2994_v0 }
 0x35c   :  { %v2865_v32 = vpack.c.bf16 %v1433_v15, %v1432_v49 }
 0x35d   :  { %2863 = vmatpush3.bf16.msra.mxu0 %v2862_v35 }
 0x35e   :  { %2864 = vmatprep.subr.bf16.mxu0 %v4362_v58 }
 0x361   :  { %2866 = vmatpush3.bf16.msra.mxu0 %v2865_v32 }
 0x3e6   :  { %v1386_v46 = vpop.xlane.xlu0 %1385 }
 0x3e7   :  { %v1388_v39 = vmul.f32 0.0078125, %v1386_v46 }
 0x3e8   :  { %v1392_v50 = vpop.xlane.xlu1 %1391 }
 0x3e9   :  { %v1394_v13 = vmul.f32 %v1388_v39, %v1388_v39  ;;  %v1393_v40 = vmul.f32 0.0078125, %v1392_v50  ;;  %v1397_v58 = vsub.f32 %v2868_v52, %v1388_v39  ;;  %v4363_v52 = vlaneseq }
 0x3eb   :  { %v1395_v60 = vsub.f32 %v1393_v40, %v1394_v13  ;;  %v1512_v38 = vand.u32 127, %v4363_v52  ;;  %v2995_v13 = vmov 1966171168  }
 0x3ec   :  { %v1558_v40 = vunpack.c.l.s4 %v2995_v13 }
 0x3ed   :  { %v1396_v59 = vmax.f32 %v1395_v60, 0.0  ;;  %vm1527_vm4 = vcmp.eq.s32.totalorder %v1512_v38, 4  ;;  %vm1514_vm5 = vcmp.lt.s32.totalorder %v1512_v38, 4  ;;  %vm1530_vm6 = vcmp.eq.s32.totalorder %v1512_v38, 5  ;;  %v1912_v60 = vld [vmem:[%s4289_s16] ss:$0 sm:$0xff] }
 0x3ee   :  { %s2996_s16 = smov [#allocation7]  }
 0x3ef   :  { %v1398_v8 = vadd.f32 1e-05, %v1396_v59  ;;  %v1559_v59 = vunpack.c.0.s8 %v1558_v40 }
 0x3f1   :  { %2884 = vrsqrt.f32 %v1398_v8  ;;  %v1913_v8 = vld [vmem:[%s4290_s17] ss:$0 sm:$0xff]  ;;  %s1766_s17 = sshll.u32 %s2996_s16, 4  ;;  %s1767_s17 = int_to_ptr.vmem [resolvable:$true] %s1766_s17 }
 0x3f2   :  { %s2916_s11 = scalar_lea.vmem %s1767_s17, 32  ;;  %p2921_p9 = scmp.lt.s32.totalorder %s1767_s17, %s1767_s17 }
 0x3f3   :  { %p2917_p8 = scmp.ne.s32.totalorder %s1767_s17, %s2916_s11  ;;  %p2922_p10 = scmp.lt.s32.totalorder %s2916_s11, %s2916_s11 }
 0x3f5   :  { %p2923_p11 = por %p2922_p10, %p2921_p9 }
 0x3f7   :  { %p2924_p12 = pnand %p2923_p11, %p2917_p8 }
 0x3fb   :  { %v2885_v30 = vpop.eup %2884 }
 0x3fc   :  { %v1400_v27 = vmul.f32 %v2885_v30, %v1397_v58 }
 0x3fe   :  { %v1408_v42 = vmul.f32 %v1909_v31, %v1400_v27  ;;  %v1562_v27 = vsub.s32 %v1559_v59, %v3725_v9 }
 0x400   :  { %v1416_v62 = vadd.f32 %v1910_v23, %v1408_v42 }
 0x402   :  { %2886 = vtanh.f32 %v1416_v62 }
 0x40c   :  { %v2887_v43 = vpop.eup %2886 }
 0x40d   :  { %1749 = vst [vmem:[#allocation7] sm:$0x3] %v2887_v43  ;;  %2569 = vmatmul.mubr.f32.vlgmr.msra.gmra.mrb[10].mxu0 %v2887_v43 }
 0x4e0   :  { %v1507_v35 = vpop.f32.mrb[10].mxu0 }
 0x4e1   :  { %v1508_v49 = vadd.f32 %v1911_v14, %v1507_v35  ;;  %v2570_v15 = vpop.f32.mrb[11].mxu0 }
 0x4e3   :  { %2888 = vtanh.f32 %v1508_v49  ;;  %v4110_v32 = vsel %vm1527_vm4, %v1508_v49, 0.0  ;;  %v1515_v46 = vsel %vm1514_vm5, %v1508_v49, -inf }
 0x4e4   :  { %v1516_v39 = vsel %vm1383_vm3, %v1515_v46, -inf }
 0x4e5   :  { %1517 = vmax.xlane.f32.xlu0 %v1516_v39 }
 0x4ed   :  { %v2889_v50 = vpop.eup %2888 }
 0x4ee   :  { %1533 = vperm.xlu1 %2882, %v2889_v50  }
 0x56d   :  { %v1534_v58 = vpop.permute.xlu1 %1533 }
 0x56e   :  { %v4119_v30 = vsel %vm1530_vm6, %v1534_v58, 0.0  ;;  %v1546_v31 = vmul.f32 %v1912_v60, %v1534_v58 }
 0x570   :  { %v1554_v23 = vadd.f32 %v1913_v8, %v1546_v31  ;;  %v4365_v31 = vld [vmem:[#allocation22_spill] sm:$0xff] }
 0x572   :  { %v1555_v42 = vmul.f32 %v2887_v43, %v1554_v23  ;;  %v1518_v62 = vpop.xlane.xlu0 %1517  ;;  %v4367_v23 = vld [vmem:[#allocation26_spill] sm:$0xff] }
 0x573   :  { %v1519_v0 = vsub.f32 %v1515_v46, %v1518_v62  ;;  %v4369_v62 = vld [vmem:[#allocation30_spill] sm:$0xff] }
 0x574   :  { %v1563_v52 = vrot.slane %v1555_v42, %v1562_v27  ;;  %v4368_v42 = vld [vmem:[#allocation28_spill] sm:$0xff] }
 0x575   :  { %v1520_v38 = vmul.f32 1.442695, %v1519_v0  ;;  %v4370_v0 = vld [vmem:[#allocation32_spill] sm:$0xff] }
 0x576   :  { %v1564_v14 = vcombine.high %v1563_v52, %v1563_v52  ;;  %v1571_v35 = vrot.slane %v1563_v52, %v1562_v27 }
 0x577   :  { %2890 = vpow2.f32 %v1520_v38  ;;  %v4371_v38 = vld [vmem:[#allocation34_spill] sm:$0xff] }
 0x578   :  { %v1578_v49 = vrot.slane %v1564_v14, %v1562_v27  ;;  %v1582_v15 = vrot.slane %v1571_v35, %v3729_v11  ;;  %v4366_v27 = vld [vmem:[#allocation24_spill] sm:$0xff]  ;;  %v4373_v35 = vld [vmem:[#allocation38_spill] sm:$0xff] }
 0x579   :  { %v4372_v14 = vld [vmem:[#allocation36_spill] sm:$0xff] }
 0x57a   :  { %v1586_v39 = vrot.slane %v1578_v49, %v3729_v11  ;;  %v1589_v50 = vmul.f32 %v1582_v15, %v3802_v4  ;;  %v1590_v13 = vmul.f32 %v1582_v15, %v3806_v6  ;;  %v1591_v9 = vmul.f32 %v1582_v15, %v3810_v10  ;;  %v4374_v49 = vld [vmem:[#allocation13_spill] sm:$0xff] }
 0x57b   :  { %v1592_v43 = vmul.f32 %v1582_v15, %v3814_v17  ;;  %v1593_v46 = vmul.f32 %v1582_v15, %v3818_v19  ;;  %v1594_v40 = vmul.f32 %v1582_v15, %v3836_v26  ;;  %v1595_v60 = vmul.f32 %v1582_v15, %v3853_v37 }
 0x57c   :  { %v1596_v59 = vmul.f32 %v1582_v15, %v3879_v12  ;;  %v1597_v8 = vmul.f32 %v1582_v15, %v3896_v2  ;;  %v1598_v11 = vmul.f32 %v1582_v15, %v3920_v48  ;;  %v1599_v4 = vmul.f32 %v1582_v15, %v3937_v20 }
 0x57d   :  { %v1600_v6 = vmul.f32 %v1582_v15, %v3961_v57  ;;  %v1601_v10 = vmul.f32 %v1582_v15, %v3978_v41  ;;  %v1602_v17 = vmul.f32 %v1582_v15, %v4002_v51  ;;  %v1603_v19 = vmul.f32 %v1582_v15, %v4019_v29 }
 0x57e   :  { %v1604_v26 = vmul.f32 %v1582_v15, %v4036_v45  ;;  %v1605_v37 = vmul.f32 %v1586_v39, %v3800_v3  ;;  %v1606_v12 = vmul.f32 %v1586_v39, %v3804_v5  ;;  %v1607_v2 = vmul.f32 %v1586_v39, %v3808_v7 }
 0x57f   :  { %v1608_v48 = vmul.f32 %v1586_v39, %v3812_v16  ;;  %v1609_v20 = vmul.f32 %v1586_v39, %v3816_v18  ;;  %v1610_v57 = vmul.f32 %v1586_v39, %v3834_v25  ;;  %v1611_v41 = vmul.f32 %v1586_v39, %v3851_v36 }
 0x580   :  { %v1612_v51 = vmul.f32 %v1586_v39, %v3877_v54  ;;  %v1613_v29 = vmul.f32 %v1586_v39, %v3894_v1  ;;  %v1614_v45 = vmul.f32 %v1586_v39, %v3918_v47  ;;  %v1615_v3 = vmul.f32 %v1586_v39, %v3935_v63 }
 0x581   :  { %v1616_v5 = vmul.f32 %v1586_v39, %v3959_v55  ;;  %v1617_v7 = vmul.f32 %v1586_v39, %v3976_v56  ;;  %v1618_v16 = vmul.f32 %v1586_v39, %v4000_v28  ;;  %v1619_v18 = vmul.f32 %v1586_v39, %v4016_v22  ;;  %v4159_v58 = vpop.eup %2890  ;;  %v4364_v55 = vld [vmem:[#allocation20_spill] sm:$0xff] }
 0x582   :  { %v1620_v25 = vmul.f32 %v1586_v39, %v4034_v34  ;;  %v1621_v36 = vadd.f32 %v1589_v50, %v3825_v21  ;;  %v1622_v54 = vadd.f32 %v1590_v13, %v3832_v24  ;;  %v1623_v1 = vadd.f32 %v1591_v9, %v3847_v33  ;;  %v4375_v39 = vld [vmem:[#allocation14_spill] sm:$0xff]  ;;  %v4376_v13 = vld [vmem:[#allocation15_spill] sm:$0xff] }
 0x583   :  { %v1624_v47 = vadd.f32 %v1592_v43, %v3864_v44  ;;  %v1625_v63 = vadd.f32 %v1593_v46, %v3875_v53  ;;  %v1626_v56 = vadd.f32 %v1594_v40, %v3890_v61  ;;  %v1627_v28 = vadd.f32 %v1595_v60, %v4364_v55  ;;  %v4377_v43 = vld [vmem:[#allocation16_spill] sm:$0xff]  ;;  %v4378_v40 = vld [vmem:[#allocation17_spill] sm:$0xff] }
 0x584   :  { %v1628_v22 = vadd.f32 %v1596_v59, %v4365_v31  ;;  %v1629_v34 = vadd.f32 %v1597_v8, %v4366_v27  ;;  %v1630_v21 = vadd.f32 %v1598_v11, %v4367_v23  ;;  %v1631_v24 = vadd.f32 %v1599_v4, %v4368_v42  ;;  %v4379_v59 = vld [vmem:[#allocation18_spill] sm:$0xff]  ;;  %v4380_v11 = vld [vmem:[#allocation19_spill] sm:$0xff] }
 0x585   :  { %v1632_v33 = vadd.f32 %v1600_v6, %v4369_v62  ;;  %v1633_v52 = vadd.f32 %v1601_v10, %v4370_v0  ;;  %v1634_v44 = vadd.f32 %v1602_v17, %v4371_v38  ;;  %v1635_v53 = vadd.f32 %v1603_v19, %v4372_v14  ;;  %v4381_v6 = vld [vmem:[#allocation21_spill] sm:$0xff]  ;;  %v4382_v17 = vld [vmem:[#allocation23_spill] sm:$0xff] }
 0x586   :  { %v1636_v61 = vadd.f32 %v1604_v26, %v4373_v35  ;;  %v1637_v15 = vadd.f32 %v1605_v37, %v4374_v49  ;;  %v1638_v50 = vadd.f32 %v1606_v12, %v4375_v39  ;;  %v1639_v9 = vadd.f32 %v1607_v2, %v4376_v13  ;;  %v4383_v26 = vld [vmem:[#allocation25_spill] sm:$0xff]  ;;  %v4384_v12 = vld [vmem:[#allocation27_spill] sm:$0xff] }
 0x587   :  { %v4178_v46 = vadd.f32 %v1608_v48, %v4377_v43  ;;  %v4181_v60 = vadd.f32 %v1609_v20, %v4378_v40  ;;  %v4184_v8 = vadd.f32 %v1610_v57, %v4379_v59  ;;  %v4187_v4 = vadd.f32 %v1611_v41, %v4380_v11  ;;  %v4385_v48 = vld [vmem:[#allocation29_spill] sm:$0xff]  ;;  %v4386_v57 = vld [vmem:[#allocation31_spill] sm:$0xff] }
 0x588   :  { %v4190_v10 = vadd.f32 %v1612_v51, %v4381_v6  ;;  %v4193_v19 = vadd.f32 %v1613_v29, %v4382_v17  ;;  %v4196_v37 = vadd.f32 %v1614_v45, %v4383_v26  ;;  %v4199_v2 = vadd.f32 %v1615_v3, %v4384_v12  ;;  %v4387_v41 = vld [vmem:[#allocation33_spill] sm:$0xff]  ;;  %v4388_v51 = vld [vmem:[#allocation35_spill] sm:$0xff] }
 0x589   :  { %v4202_v20 = vadd.f32 %v1616_v5, %v4385_v48  ;;  %v4205_v55 = vadd.f32 %v1617_v7, %v4386_v57  ;;  %v4208_v31 = vadd.f32 %v1618_v16, %v4387_v41  ;;  %v4211_v27 = vadd.f32 %v1619_v18, %v4388_v51  ;;  %v4389_v29 = vld [vmem:[#allocation37_spill] sm:$0xff] }
 0x58a   :  { %v4214_v23 = vadd.f32 %v1620_v25, %v4389_v29  ;;  %v1914_v45 = vclamps-f32 %v1621_v36, 2.0  ;;  %v1915_v42 = vclamps-f32 %v1622_v54, 2.0  ;;  %v1916_v62 = vclamps-f32 %v1623_v1, 2.0 }
 0x58b   :  { %v1917_v3 = vclamps-f32 %v1624_v47, 2.0  ;;  %v1918_v0 = vclamps-f32 %v1625_v63, 2.0  ;;  %v1919_v38 = vclamps-f32 %v1626_v56, 2.0  ;;  %v1920_v5 = vclamps-f32 %v1627_v28, 2.0 }
 0x58c   :  { %v1921_v14 = vclamps-f32 %v1628_v22, 2.0  ;;  %v1922_v35 = vclamps-f32 %v1629_v34, 2.0  ;;  %v1923_v7 = vclamps-f32 %v1630_v21, 2.0  ;;  %v1924_v49 = vclamps-f32 %v1631_v24, 2.0  ;;  %1717 = vst [vmem:[#allocation9] sm:$0xff] %v1914_v45  ;;  %1718 = vst [vmem:[#allocation9 + $0x8] sm:$0xff] %v1915_v42 }
 0x58d   :  { %1719 = vst [vmem:[#allocation9 + $0x10] sm:$0xff] %v1916_v62  ;;  %v1925_v16 = vclamps-f32 %v1632_v33, 2.0  ;;  %v1926_v18 = vclamps-f32 %v1633_v52, 2.0  ;;  %v1927_v39 = vclamps-f32 %v1634_v44, 2.0  ;;  %v1928_v13 = vclamps-f32 %v1635_v53, 2.0  ;;  %1720 = vst [vmem:[#allocation9 + $0x18] sm:$0xff] %v1917_v3 }
 0x58e   :  { %1721 = vst [vmem:[#allocation9 + $0x20] sm:$0xff] %v1918_v0  ;;  %1722 = vst [vmem:[#allocation9 + $0x28] sm:$0xff] %v1919_v38  ;;  %v1929_v25 = vclamps-f32 %v1636_v61, 2.0  ;;  %v1930_v36 = vclamps-f32 %v1637_v15, 2.0  ;;  %v1931_v54 = vclamps-f32 %v1638_v50, 2.0  ;;  %v1932_v1 = vclamps-f32 %v1639_v9, 2.0 }
 0x58f   :  { %1723 = vst [vmem:[#allocation9 + $0x30] sm:$0xff] %v1920_v5  ;;  %1724 = vst [vmem:[#allocation9 + $0x38] sm:$0xff] %v1921_v14  ;;  %v1933_v47 = vclamps-f32 %v4178_v46, 2.0  ;;  %v1934_v63 = vclamps-f32 %v4181_v60, 2.0  ;;  %v1935_v56 = vclamps-f32 %v4184_v8, 2.0  ;;  %v1936_v28 = vclamps-f32 %v4187_v4, 2.0 }
 0x590   :  { %1725 = vst [vmem:[#allocation9 + $0x40] sm:$0xff] %v1922_v35  ;;  %1726 = vst [vmem:[#allocation9 + $0x48] sm:$0xff] %v1923_v7  ;;  %v1937_v22 = vclamps-f32 %v4190_v10, 2.0  ;;  %v1938_v34 = vclamps-f32 %v4193_v19, 2.0  ;;  %v1939_v21 = vclamps-f32 %v4196_v37, 2.0  ;;  %v1940_v24 = vclamps-f32 %v4199_v2, 2.0 }
 0x591   :  { %1727 = vst [vmem:[#allocation9 + $0x50] sm:$0xff] %v1924_v49  ;;  %1728 = vst [vmem:[#allocation9 + $0x58] sm:$0xff] %v1925_v16  ;;  %v1941_v33 = vclamps-f32 %v4202_v20, 2.0  ;;  %v1942_v52 = vclamps-f32 %v4205_v55, 2.0  ;;  %v1943_v44 = vclamps-f32 %v4208_v31, 2.0  ;;  %v1944_v53 = vclamps-f32 %v4211_v27, 2.0 }
 0x592   :  { %1729 = vst [vmem:[#allocation9 + $0x60] sm:$0xff] %v1926_v18  ;;  %1730 = vst [vmem:[#allocation9 + $0x68] sm:$0xff] %v1927_v39  ;;  %v1945_v61 = vclamps-f32 %v4214_v23, 2.0  ;;  %v1522_v15 = vsel %vm1383_vm3, %v4159_v58, 0.0 }
 0x593   :  { %1731 = vst [vmem:[#allocation9 + $0x70] sm:$0xff] %v1928_v13  ;;  %1732 = vst [vmem:[#allocation9 + $0x78] sm:$0xff] %v1929_v25  ;;  %1523 = vadd.xlane.f32.xlu0 %v1522_v15 }
 0x594   :  { %1733 = vst [vmem:[#allocation9 + $0x80] sm:$0xff] %v1930_v36  ;;  %1734 = vst [vmem:[#allocation9 + $0x88] sm:$0xff] %v1931_v54 }
 0x595   :  { %1735 = vst [vmem:[#allocation9 + $0x90] sm:$0xff] %v1932_v1  ;;  %1736 = vst [vmem:[#allocation9 + $0x98] sm:$0xff] %v1933_v47 }
 0x596   :  { %1737 = vst [vmem:[#allocation9 + $0xa0] sm:$0xff] %v1934_v63  ;;  %1738 = vst [vmem:[#allocation9 + $0xa8] sm:$0xff] %v1935_v56 }
 0x597   :  { %1739 = vst [vmem:[#allocation9 + $0xb0] sm:$0xff] %v1936_v28  ;;  %1740 = vst [vmem:[#allocation9 + $0xb8] sm:$0xff] %v1937_v22 }
 0x598   :  { %1741 = vst [vmem:[#allocation9 + $0xc0] sm:$0xff] %v1938_v34  ;;  %1742 = vst [vmem:[#allocation9 + $0xc8] sm:$0xff] %v1939_v21 }
 0x599   :  { %1743 = vst [vmem:[#allocation9 + $0xd0] sm:$0xff] %v1940_v24  ;;  %1744 = vst [vmem:[#allocation9 + $0xd8] sm:$0xff] %v1941_v33 }
 0x59a   :  { %1745 = vst [vmem:[#allocation9 + $0xe0] sm:$0xff] %v1942_v52  ;;  %1746 = vst [vmem:[#allocation9 + $0xe8] sm:$0xff] %v1943_v44 }
 0x59b   :  { %1747 = vst [vmem:[#allocation9 + $0xf0] sm:$0xff] %v1944_v53  ;;  %1748 = vst [vmem:[#allocation9 + $0xf8] sm:$0xff] %v1945_v61 }
 0x59c   :  { %2927 = shalt.err (!%p2924_p12)
}
 0x59d   :  { %s2928_s28 = scalar_lea.hbm %s4292_s19, 32 }
 0x59e   :  { %p2929_p13 = scmp.ne.s32.totalorder %s4292_s19, %s2928_s28  ;;  %p2932_p0 = scmp.lt.u32.totalorder %s2928_s28, %s4292_s19 }
 0x5a0   :  { %p2934_p1 = pnand %p2932_p0, %p2929_p13 }
 0x5a2   :  { %2937 = shalt.err (!%p2934_p1)
}
 0x5a3   :  { %1769 = dma.vmem_to_hbm [thread:$0]  %s1767_s17, 32, %s4292_s19, [#allocation8]  }
 0x5a4   :  { %s2997_s21 = smov [#allocation9]  }
 0x5a5   :  { %s1775_s1 = sshll.u32 %s2997_s21, 4  ;;  %s1776_s1 = int_to_ptr.vmem [resolvable:$true] %s1775_s1 }
 0x5a6   :  { %s2938_s23 = scalar_lea.vmem %s1776_s1, 4096  ;;  %p2943_p3 = scmp.lt.s32.totalorder %s1776_s1, %s1776_s1 }
 0x5a7   :  { %p2939_p2 = scmp.ne.s32.totalorder %s1776_s1, %s2938_s23  ;;  %p2944_p4 = scmp.lt.s32.totalorder %s2938_s23, %s2938_s23 }
 0x5a9   :  { %p2945_p5 = por %p2944_p4, %p2943_p3 }
 0x5ab   :  { %p2946_p6 = pnand %p2945_p5, %p2939_p2 }
 0x5ad   :  { %2949 = shalt.err (!%p2946_p6)
}
 0x5ae   :  { %s2950_s22 = scalar_lea.hbm %s4293_s20, 4096 }
 0x5af   :  { %p2951_p7 = scmp.ne.s32.totalorder %s4293_s20, %s2950_s22  ;;  %p2954_p8 = scmp.lt.u32.totalorder %s2950_s22, %s4293_s20 }
 0x5b1   :  { %p2956_p9 = pnand %p2954_p8, %p2951_p7 }
 0x5b3   :  { %2959 = shalt.err (!%p2956_p9)
}
 0x5b4   :  { %1781 = dma.vmem_to_hbm [thread:$0]  %s1776_s1, 4096, %s4293_s20, [#allocation8], %s2989_s4, %s2989_s4, %s2990_s29  }
 0x5b5   :  { %s2998_s13 = smov [#allocation6]  }
 0x5b6   :  { %s1756_s15 = sshll.u32 %s2998_s13, 4  ;;  %s1757_s15 = int_to_ptr.vmem [resolvable:$true] %s1756_s15 }
 0x5b7   :  { %s2960_s7 = scalar_lea.vmem %s1757_s15, 32  ;;  %p2965_p11 = scmp.lt.s32.totalorder %s1757_s15, %s1757_s15 }
 0x5b8   :  { %p2961_p10 = scmp.ne.s32.totalorder %s1757_s15, %s2960_s7  ;;  %p2966_p12 = scmp.lt.s32.totalorder %s2960_s7, %s2960_s7 }
 0x5ba   :  { %p2967_p13 = por %p2966_p12, %p2965_p11 }
 0x5bc   :  { %p2968_p0 = pnand %p2967_p13, %p2961_p10 }
 0x620   :  { %v1524_v50 = vpop.xlane.xlu0 %1523 }
 0x621   :  { %2892 = vrcp.f32 %v1524_v50 }
 0x62b   :  { %v2893_v9 = vpop.eup %2892 }
 0x62c   :  { %v1526_v43 = vmul.f32 %v2893_v9, %v4159_v58 }
 0x62e   :  { %v1529_v46 = vadd.f32 %v4110_v32, %v1526_v43 }
 0x630   :  { %v1537_v40 = vadd.f32 %v4119_v30, %v1529_v46 }
 0x632   :  { %1538 = vst [vmem:[#allocation6] sm:$0x3] %v1537_v40 }
 0x633   :  { %2971 = shalt.err (!%p2968_p0)
}
 0x634   :  { %s2972_s29 = scalar_lea.hbm %s4291_s18, 32 }
 0x635   :  { %p2973_p1 = scmp.ne.s32.totalorder %s4291_s18, %s2972_s29  ;;  %p2976_p2 = scmp.lt.u32.totalorder %s2972_s29, %s4291_s18 }
 0x637   :  { %p2978_p3 = pnand %p2976_p2, %p2973_p1 }
 0x639   :  { %2981 = shalt.err (!%p2978_p3)
}
 0x63a   :  { %1759 = dma.vmem_to_hbm [thread:$0]  %s1757_s15, 32, %s4291_s18, [#allocation5]  }
 0x63b   :  { %2984 = dma.done.wait [#allocation5], 32  }
 0x63c   :  { %2985 = vsyncadd [#allocation5], 4294967264 }
 0x63d   :  { %2986 = dma.done.wait [#allocation8], 4128  }
 0x63e   :  { %2987 = vsyncadd [#allocation8], 4294963168 }
 0x63f   :  { %1791 = vsyncpa [#allocation4], 1 }
 0x640   :  { %1792 = vsyncpa [#allocation5], 1 }
 0x641   :  { %1793 = vsyncpa [#allocation8], 1 }

</bundles_post_ra>
